<compile_context>
chip_gen: v6e
topology: v6e:2x2x1
jax: 0.10.0
libtpu: 0.0.40
codegen_flags: <defaults>
</compile_context>

<pallas_src>
import functools
import math

import jax
import jax.numpy as jnp
import numpy as np
from jax.experimental import pallas as pl
from jax.experimental.pallas import tpu as pltpu

_LANE = 128


def _round_up(x, m):
    return ((x + m - 1) // m) * m


def _vmem_capacity_bytes():
    """Physical VMEM per TensorCore (v5e/v6e: 128 MiB, v7x: 64 MiB)."""
    try:
        info = pltpu.get_tpu_info()
        for name in ("vmem_capacity_bytes", "vmem_size_bytes", "vmem_bytes"):
            v = getattr(info, name, None)
            if v:
                return int(v)
    except Exception:
        pass
    return 64 << 20          # conservative (v7x-safe) fallback


def _vmem_limit_bytes():
    cap = _vmem_capacity_bytes()
    # ~48 MiB on 64 MiB parts (v7x), ~96 MiB on 128 MiB parts (v5e/v6e);
    # always leaves Mosaic internal-scratch headroom.
    return int(max(32 << 20, min((cap * 3) // 4, cap - (8 << 20))))


def _choose_group_rows(rows_tile, n_corners):
    """Smallest multiple of n_corners >= 128 that divides rows_tile.  Only falls
    back to rows_tile when nothing smaller divides it (keeps score buffers
    O(rows_tile * group_rows), never O(rows_tile^2))."""
    if rows_tile <= _LANE:
        return rows_tile
    g = _round_up(_LANE, n_corners)
    while rows_tile % g != 0:
        g += n_corners
    return min(g, rows_tile)


def _tile_vmem_bytes(ta, n_corners, tdim, c):
    """Per-grid-step VMEM footprint estimate with 128-lane padding on every
    buffer (BlockSpec operands double-buffered)."""
    lane = lambda n: _round_up(n, _LANE)
    rows = ta * n_corners
    gr = _choose_group_rows(rows, n_corners)
    ng = rows // gr
    b = 0
    b += 2 * rows * lane(tdim) * 2                    # feat block (bf16, dbuf)
    b += 2 * ta * lane(n_corners) * 4                 # corner-mask block
    b += 2 * gr * lane(gr) * 4                        # block-diag attn bias
    b += 2 * (_round_up(tdim, 16) * lane(3 * c) * 2   # fused Wqkv (bf16)
              + 8 * lane(3 * c) * 4)                  # fused bias
    b += 2 * ta * lane(c) * 4                         # output block
    b += rows * lane(3 * c) * 4                       # fused qkv matmul result (f32)
    b += rows * lane(3 * c) * 2                       # qkv bf16
    b += 3 * rows * lane(c) * 2                       # q / k / v bf16 views
    b += 2 * ng * gr * lane(gr) * 4                   # scores + probs (f32)
    b += ng * gr * lane(gr) * 2                       # probs bf16 for PV matmul
    b += 2 * rows * lane(c) * 4                       # attn + masked attn (f32)
    return b


def _choose_block_anchors(n_anchors, n_corners, tdim, c, max_anchors):
    """Largest anchor tile (multiple of 32, <= max_anchors) whose lane-padded
    footprint fits the per-generation VMEM budget."""
    budget = _vmem_limit_bytes() - (8 << 20)
    ta = min(_round_up(max(1, max_anchors), 32), _round_up(n_anchors, 32))
    ta = max(32, ta)
    # 1.25x safety factor for compiler temporaries / spill headroom.
    while ta > 32 and (_tile_vmem_bytes(ta, n_corners, tdim, c) * 5) // 4 > budget:
        ta = max(32, _round_up(ta // 2, 32))
    return ta


# -----------------------------------------------------------------------------
# Pallas kernel: fused Wqkv + block-diagonal grouped attention + masked mean
# -----------------------------------------------------------------------------
def _triplet_kernel(feat_ref, mask_ref, bias_ref, wqkv_ref, bqkv_ref, out_ref, *,
                    n_corners, group_rows):
    rows = feat_ref.shape[0]                       # rows = TA * K
    c3 = wqkv_ref.shape[-1]
    c = c3 // 3
    n_anchor = rows // n_corners
    n_groups = rows // group_rows

    # Single fused MXU matmul for q|k|v (f32 accumulation), one bias add, one
    # bf16 cast so the attention matmuls get bf16 operands and the resident
    # qkv is half-sized (matters most under v7x's 64 MiB VMEM).
    qkv = jnp.dot(feat_ref[...], wqkv_ref[...],
                  preferred_element_type=jnp.float32) + bqkv_ref[...]
    qkv = qkv.astype(jnp.bfloat16)

    # 1/sqrt(C) softmax scale is pre-folded into the q columns of Wqkv.
    q = qkv[:, :c].reshape(n_groups, group_rows, c)
    k = qkv[:, c:2 * c].reshape(n_groups, group_rows, c)
    v = qkv[:, 2 * c:].reshape(n_groups, group_rows, c)

    # Grouped attention: one dense (GR, GR) bf16 score matmul per group with a
    # precomputed block-diagonal additive bias (0 inside an anchor's own K x K
    # block, -1e30 elsewhere) so each anchor attends only to its own K corners.
    s = jnp.einsum("grc,gkc->grk", q, k, preferred_element_type=jnp.float32)
    s = s + bias_ref[...][None, :, :]
    s = s - jnp.max(s, axis=-1, keepdims=True)
    p = jnp.exp(s)
    p = p * pl.reciprocal(jnp.sum(p, axis=-1, keepdims=True), approx=True)
    attn = jnp.einsum("grk,gkc->grc", p.astype(jnp.bfloat16), v,
                      preferred_element_type=jnp.float32)           # (ng, GR, C)

    # Masked mean over each anchor's K corners (lane-dense (TA, K) mask,
    # denominator clamped to >= 1 so padded / empty anchors give 0, not NaN).
    m = mask_ref[...]                                               # (TA, K) f32
    attn3 = attn.reshape(n_anchor, n_corners, c)
    ksum = jnp.sum(attn3 * m[:, :, None], axis=1)                   # (TA, C)
    denom = jnp.maximum(jnp.sum(m, axis=1, keepdims=True), 1.0)     # (TA, 1)
    # Exact reciprocal here: it scales the output directly.
    out_ref[...] = ksum * (jnp.float32(1.0) / denom)


def triplet_messages_pallas(feat, mask2d, wqkv, bqkv, *, n_corners, block_anchors):
    rows_total, tdim = feat.shape
    n_anchors = rows_total // n_corners
    c3 = wqkv.shape[-1]
    c = c3 // 3
    ta = block_anchors
    assert n_anchors % ta == 0, (n_anchors, ta)

    rows_tile = ta * n_corners
    group_rows = _choose_group_rows(rows_tile, n_corners)
    n_tiles = n_anchors // ta

    # Precomputed block-diagonal additive attention bias; constant VMEM-resident
    # input (replaces per-step iota / int-div / compare / select passes).
    ridx = np.arange(group_rows) // n_corners
    attn_bias = jnp.asarray(
        np.where(ridx[:, None] == ridx[None, :], 0.0, -1e30).astype(np.float32))

    kernel = functools.partial(_triplet_kernel, n_corners=n_corners,
                               group_rows=group_rows)

    # Advisory cost estimate for XLA's scheduler.
    groups_total = rows_total // group_rows
    flops = int(2 * rows_total * tdim * c3
                + 2 * 2 * groups_total * group_rows * group_rows * c)
    transcendentals = int(groups_total * group_rows * group_rows)
    bytes_accessed = int(rows_total * tdim * 2 + mask2d.size * 4
                         + tdim * c3 * 2 + c3 * 4
                         + group_rows * group_rows * 4 + n_anchors * c * 4)

    vmem_limit = _vmem_limit_bytes()

    grid_spec = pltpu.PrefetchScalarGridSpec(
        num_scalar_prefetch=0,
        grid=(n_tiles,),
        in_specs=[
            pl.BlockSpec((rows_tile, tdim), lambda i: (i, 0)),         # packed feats
            pl.BlockSpec((ta, n_corners), lambda i: (i, 0)),           # corner mask
            pl.BlockSpec((group_rows, group_rows), lambda i: (0, 0)),  # attn bias
            pl.BlockSpec((tdim, c3), lambda i: (0, 0)),                # fused Wqkv
            pl.BlockSpec((1, c3), lambda i: (0, 0)),                   # fused bias
        ],
        # TODO(synk): a lane-dense (ta//4, 4*C) output slab would remove the
        # 32-lane masked stores; output traffic is small, so left as-is.
        out_specs=pl.BlockSpec((ta, c), lambda i: (i, 0)),
    )

    return pl.pallas_call(
        kernel,
        out_shape=jax.ShapeDtypeStruct((n_anchors, c), jnp.float32),
        grid_spec=grid_spec,
        compiler_params=pltpu.CompilerParams(
            # TODO(synk): on v7x, verify "parallel" shards the anchor axis over
            # both TensorCores; if not, switch to CORE_PARALLEL / pl.core_map.
            dimension_semantics=("parallel",),
            vmem_limit_bytes=vmem_limit),
        cost_estimate=pl.CostEstimate(flops=flops,
                                      transcendentals=transcendentals,
                                      bytes_accessed=bytes_accessed),
    )(feat, mask2d, attn_bias, wqkv, bqkv)


# Pure-JAX reference of the same message computation (for a self-check).
def triplet_messages_ref(feat, mask2d, wqkv, bqkv, *, n_corners, block_anchors=None):
    del block_anchors
    rows, _ = feat.shape
    c = wqkv.shape[-1] // 3
    na = rows // n_corners
    qkv = jnp.dot(feat, wqkv, preferred_element_type=jnp.float32) + bqkv
    q = qkv[:, :c].reshape(na, n_corners, c)
    k = qkv[:, c:2 * c].reshape(na, n_corners, c)
    v = qkv[:, 2 * c:].reshape(na, n_corners, c)
    s = jnp.einsum("nqc,nkc->nqk", q, k)     # softmax scale folded into Wq at init
    p = jax.nn.softmax(s, axis=-1)
    attn = jnp.einsum("nqk,nkc->nqc", p, v)
    denom = jnp.maximum(jnp.sum(mask2d, axis=1, keepdims=True), 1.0)
    return jnp.sum(attn * mask2d[:, :, None], axis=1) / denom


# -----------------------------------------------------------------------------
# TripletGNN forward (glue: gathers, geometry, angle embedding, scatter, concat)
# triplet_mlp_method='concat', enable_dist_embedding=False (module defaults).
# -----------------------------------------------------------------------------
@functools.partial(jax.jit, static_argnames=("use_pallas", "block_anchors"))
def triplet_gnn_forward(params, x, pos, anchor_indices, corner_indices,
                        corner_masks, use_pallas=True, block_anchors=1024):
    N, C = x.shape
    Np, K, _ = corner_indices.shape
    D = params["div_term"].shape[0] * 2
    tdim = 2 * C + D

    padded_x = jnp.concatenate([x, jnp.zeros((1, C), x.dtype)], axis=0)
    padded_pos = jnp.concatenate([pos, jnp.zeros((1, 3), pos.dtype)], axis=0)

    anchor_pts = padded_pos[anchor_indices]                          # (N', 3)
    v0 = padded_pos[corner_indices[:, :, 0]] - anchor_pts[:, None, :]
    v1 = padded_pos[corner_indices[:, :, 1]] - anchor_pts[:, None, :]
    v0 = v0.at[:, :, 2].set(0.0)
    v1 = v1.at[:, :, 2].set(0.0)

    cos_values = jnp.sum(v0 * v1, axis=-1) / (
        jnp.linalg.norm(v0, axis=-1) * jnp.linalg.norm(v1, axis=-1) + 1e-6)
    sin_z = v0[:, :, 0] * v1[:, :, 1] - v0[:, :, 1] * v1[:, :, 0]
    reorder = sin_z < 0.0                                            # (N', K)

    ci0 = jnp.where(reorder, corner_indices[:, :, 1], corner_indices[:, :, 0])
    ci1 = jnp.where(reorder, corner_indices[:, :, 0], corner_indices[:, :, 1])

    n0 = padded_pos[ci0] - anchor_pts[:, None, :]
    n1 = padded_pos[ci1] - anchor_pts[:, None, :]
    n0 = n0.at[:, :, 2].set(0.0)
    n1 = n1.at[:, :, 2].set(0.0)
    new_sin_z = n0[:, :, 0] * n1[:, :, 1] - n0[:, :, 1] * n1[:, :, 0]
    false_full = new_sin_z < -1e-6                                   # (N', K)

    # Sinusoidal angle embedding, interleaved [sin(w0), cos(w0), sin(w1), ...]
    # exactly as SinusoidalPositionalEmbedding (fused by XLA with the gathers).
    omegas = cos_values[..., None] * params["div_term"][None, None, :]   # (N',K,D/2)
    emb = jnp.stack([jnp.sin(omegas), jnp.cos(omegas)], axis=-1).reshape(Np, K, D)

    # Packed triplet feature [x0 | x1 | emb] in bf16 (halves HBM traffic of the
    # dominant operand; all accumulation in the kernel stays f32).
    # TODO(synk): for C >= 128, move the x0/x1 gather into the kernel
    # (scalar-prefetch + DMA gather) to halve HBM traffic; at C=32 the
    # JAX-side gather is the better trade (128 B rows).
    x0 = padded_x[ci0]                                               # (N', K, C)
    x1 = padded_x[ci1]
    feat = jnp.concatenate([x0, x1, emb], axis=-1).astype(jnp.bfloat16)  # (N',K,T)

    # Anchor tile: as large as the per-generation VMEM budget allows.
    ta = _choose_block_anchors(Np, K, tdim, C, block_anchors)
    np_pad = _round_up(Np, ta)
    pad = np_pad - Np
    feat = jnp.pad(feat, ((0, pad), (0, 0), (0, 0))).reshape(np_pad * K, tdim)
    mask2d = jnp.pad(corner_masks.astype(jnp.float32), ((0, pad), (0, 0)))  # (N'p,K)

    message_fn = triplet_messages_pallas if use_pallas else triplet_messages_ref
    msg = message_fn(feat, mask2d, params["wqkv"], params["bqkv"],
                     n_corners=K, block_anchors=ta)
    msg = msg[:Np]

    x_messages = jnp.zeros_like(x).at[anchor_indices].set(msg.astype(x.dtype))
    out = jnp.concatenate([x, x_messages], axis=1)                   # (N, 2C)
    return out, false_full


# -----------------------------------------------------------------------------
# Deterministic parameter init (only Wqkv is used in the 'concat' forward path)
# -----------------------------------------------------------------------------
def init_params(key, in_channels, angle_dist_dim):
    C = in_channels
    triplet_dim = 2 * C + angle_dist_dim
    kw, kb = jax.random.split(key)
    # PyTorch Linear weight: (out=3C, in=T); y = x @ W^T + b
    W = jax.random.normal(kw, (3 * C, triplet_dim), jnp.float32) * 0.05
    b = jax.random.normal(kb, (3 * C,), jnp.float32) * 0.05
    WT = W.T                                       # (T, 3C); rows = [x0 | x1 | emb]
    # Fold the 1/sqrt(C) softmax scale into the q head (columns 0:C) so neither
    # the kernel nor the reference scales the (GR, GR) score tensor.
    scale = 1.0 / math.sqrt(C)
    WT = WT.at[:, :C].multiply(scale)
    b = b.at[:C].multiply(scale)
    wqkv = WT.astype(jnp.bfloat16)                 # fused (T, 3C) bf16 weight
    bqkv = b.reshape(1, 3 * C)                     # fused (1, 3C) f32 bias

    div_term = jnp.exp(jnp.arange(0, angle_dist_dim, 2, dtype=jnp.float32)
                       * (-jnp.log(jnp.float32(10000.0)) / angle_dist_dim))

    return dict(wqkv=wqkv, bqkv=bqkv, div_term=div_term)


if __name__ == "__main__":
    in_channels = 32       # C
    angle_dist_dim = 8     # D (even)
    N, Np, K = 10, 6, 8

    key = jax.random.PRNGKey(0)
    k_param, k_x, k_pos, k_ci = jax.random.split(key, 4)

    params = init_params(k_param, in_channels, angle_dist_dim)

    x = jax.random.normal(k_x, (N, in_channels), jnp.float32)
    pos = jax.random.normal(k_pos, (N, 3), jnp.float32)
    anchor_indices = jnp.array([0, 2, 4, 5, 7, 9], dtype=jnp.int32)

    corner_masks = (jnp.arange(K)[None, :]
                    < jnp.array([8, 5, 3, 6, 4, 7])[:, None])        # (N', K) bool
    corner_indices = jax.random.randint(k_ci, (Np, K, 2), 0, N, dtype=jnp.int32)
    # masked-out corners point at the zero-padding row (index N)
    corner_indices = jnp.where(corner_masks[:, :, None], corner_indices, N)

    out, false_full = triplet_gnn_forward(params, x, pos, anchor_indices,
                                          corner_indices, corner_masks,
                                          use_pallas=True)
    out = jax.block_until_ready(out)

    # torch: triplet_false_masks = new_sin_vector[corner_masks][:, 2] < -1e-6
    # (dynamic-shape boolean compression done eagerly outside the jitted region)
    triplet_false_masks = false_full[corner_masks]

    # Self-check against the pure-JAX reference of the same math.
    out_ref, _ = triplet_gnn_forward(params, x, pos, anchor_indices,
                                     corner_indices, corner_masks,
                                     use_pallas=False)
    np.testing.assert_allclose(np.asarray(out), np.asarray(out_ref),
                               rtol=2e-2, atol=2e-2)

    assert out.shape == (N, 2 * in_channels)
    assert triplet_false_masks.ndim == 1
    print("KERNEL_OK")
</pallas_src>

<mosaic_0001>
module attributes {stable_mosaic.version = 11 : i64} {
  func.func @_triplet_kernel(%arg0: i32, %arg1: memref<256x72xbf16, #tpu.memory_space<vmem>>, %arg2: memref<32x8xf32, #tpu.memory_space<vmem>>, %arg3: memref<128x128xf32, #tpu.memory_space<vmem>>, %arg4: memref<72x96xbf16, #tpu.memory_space<vmem>>, %arg5: memref<1x96xf32, #tpu.memory_space<vmem>>, %arg6: memref<32x32xf32, #tpu.memory_space<vmem>>) attributes {dimension_semantics = [#tpu.dimension_semantics<parallel>], iteration_bounds = array<i64: 1>, scalar_prefetch = 0 : i64, scratch_operands = 0 : i64, tpu.core_type = #tpu.core_type<tc>, window_params = [{transform_indices = @transform_0, window_bounds = array<i64: 256, 72>}, {transform_indices = @transform_1, window_bounds = array<i64: 32, 8>}, {pipeline_mode = #tpu.pipeline_mode<synchronous>, transform_indices = @transform_2, window_bounds = array<i64: 128, 128>}, {pipeline_mode = #tpu.pipeline_mode<synchronous>, transform_indices = @transform_3, window_bounds = array<i64: 72, 96>}, {pipeline_mode = #tpu.pipeline_mode<synchronous>, transform_indices = @transform_4, window_bounds = array<i64: 1, 96>}, {transform_indices = @transform_5, window_bounds = array<i64: 32, 32>}]} {
    %c0 = arith.constant 0 : index
    %c0_0 = arith.constant 0 : index
    %0 = vector.load %arg1[%c0, %c0_0] : memref<256x72xbf16, #tpu.memory_space<vmem>>, vector<256x72xbf16>
    %c0_1 = arith.constant 0 : index
    %c0_2 = arith.constant 0 : index
    %1 = vector.load %arg4[%c0_1, %c0_2] : memref<72x96xbf16, #tpu.memory_space<vmem>>, vector<72x96xbf16>
    %cst = arith.constant dense<0.000000e+00> : vector<256x96xf32>
    %2 = tpu.matmul %0, %1, %cst {dimension_numbers = #tpu.dot_dimension_numbers<[1], [0], [0], [1], [0, 0, 1, 1], [], []>} : vector<256x72xbf16>, vector<72x96xbf16>, vector<256x96xf32> -> vector<256x96xf32>
    %c0_3 = arith.constant 0 : index
    %c0_4 = arith.constant 0 : index
    %3 = vector.load %arg5[%c0_3, %c0_4] : memref<1x96xf32, #tpu.memory_space<vmem>>, vector<1x96xf32>
    %4 = vector.broadcast %3 : vector<1x96xf32> to vector<256x96xf32>
    %5 = arith.addf %2, %4 : vector<256x96xf32>
    %6 = arith.truncf %5 : vector<256x96xf32> to vector<256x96xbf16>
    %7 = vector.extract_strided_slice %6 {offsets = [0, 0], sizes = [256, 32], strides = [1, 1]} : vector<256x96xbf16> to vector<256x32xbf16>
    %8 = vector.shape_cast %7 : vector<256x32xbf16> to vector<2x128x32xbf16>
    %9 = vector.extract_strided_slice %6 {offsets = [0, 32], sizes = [256, 32], strides = [1, 1]} : vector<256x96xbf16> to vector<256x32xbf16>
    %10 = vector.shape_cast %9 : vector<256x32xbf16> to vector<2x128x32xbf16>
    %11 = vector.extract_strided_slice %6 {offsets = [0, 64], sizes = [256, 32], strides = [1, 1]} : vector<256x96xbf16> to vector<256x32xbf16>
    %12 = vector.shape_cast %11 : vector<256x32xbf16> to vector<2x128x32xbf16>
    "tpu.trace_start"() <{level = 10 : i32, message = "grc,gkc->grk"}> : () -> ()
    %cst_5 = arith.constant dense<0.000000e+00> : vector<2x128x128xf32>
    %13 = tpu.matmul %8, %10, %cst_5 {dimension_numbers = #tpu.dot_dimension_numbers<[2], [2], [1], [1], [0, 0, 0, 1, 1, 1], [0], [0]>} : vector<2x128x32xbf16>, vector<2x128x32xbf16>, vector<2x128x128xf32> -> vector<2x128x128xf32>
    "tpu.trace_stop"() : () -> ()
    %c0_6 = arith.constant 0 : index
    %c0_7 = arith.constant 0 : index
    %14 = vector.load %arg3[%c0_6, %c0_7] : memref<128x128xf32, #tpu.memory_space<vmem>>, vector<128x128xf32>
    %15 = vector.shape_cast %14 : vector<128x128xf32> to vector<1x128x128xf32>
    %16 = vector.broadcast %15 : vector<1x128x128xf32> to vector<2x128x128xf32>
    %17 = arith.addf %13, %16 : vector<2x128x128xf32>
    %cst_8 = arith.constant dense<0xFF800000> : vector<2x128xf32>
    %18 = vector.multi_reduction <maximumf>, %17, %cst_8 [2] : vector<2x128x128xf32> to vector<2x128xf32>
    %19 = vector.shape_cast %18 : vector<2x128xf32> to vector<2x128x1xf32>
    %20 = vector.broadcast %19 : vector<2x128x1xf32> to vector<2x128x128xf32>
    %21 = arith.subf %17, %20 : vector<2x128x128xf32>
    %22 = math.exp %21 : vector<2x128x128xf32>
    %cst_9 = arith.constant dense<0.000000e+00> : vector<2x128xf32>
    %23 = vector.multi_reduction <add>, %22, %cst_9 [2] : vector<2x128x128xf32> to vector<2x128xf32>
    %24 = vector.shape_cast %23 : vector<2x128xf32> to vector<2x128x1xf32>
    %25 = tpu.reciprocal %24 {approx = true} : vector<2x128x1xf32> -> vector<2x128x1xf32>
    %26 = vector.broadcast %25 : vector<2x128x1xf32> to vector<2x128x128xf32>
    %27 = arith.mulf %22, %26 : vector<2x128x128xf32>
    %28 = arith.truncf %27 : vector<2x128x128xf32> to vector<2x128x128xbf16>
    "tpu.trace_start"() <{level = 10 : i32, message = "grk,gkc->grc"}> : () -> ()
    %cst_10 = arith.constant dense<0.000000e+00> : vector<2x128x32xf32>
    %29 = tpu.matmul %28, %12, %cst_10 {dimension_numbers = #tpu.dot_dimension_numbers<[2], [1], [1], [2], [0, 0, 0, 1, 1, 2], [0], [0]>} : vector<2x128x128xbf16>, vector<2x128x32xbf16>, vector<2x128x32xf32> -> vector<2x128x32xf32>
    "tpu.trace_stop"() : () -> ()
    %c0_11 = arith.constant 0 : index
    %c0_12 = arith.constant 0 : index
    %30 = vector.load %arg2[%c0_11, %c0_12] : memref<32x8xf32, #tpu.memory_space<vmem>>, vector<32x8xf32>
    %31 = vector.shape_cast %29 : vector<2x128x32xf32> to vector<32x8x32xf32>
    %32 = vector.shape_cast %30 : vector<32x8xf32> to vector<32x8x1xf32>
    %33 = vector.broadcast %32 : vector<32x8x1xf32> to vector<32x8x32xf32>
    %34 = arith.mulf %31, %33 : vector<32x8x32xf32>
    %cst_13 = arith.constant dense<0.000000e+00> : vector<32x32xf32>
    %35 = vector.multi_reduction <add>, %34, %cst_13 [1] : vector<32x8x32xf32> to vector<32x32xf32>
    %cst_14 = arith.constant dense<0.000000e+00> : vector<32xf32>
    %36 = vector.multi_reduction <add>, %30, %cst_14 [1] : vector<32x8xf32> to vector<32xf32>
    %37 = vector.shape_cast %36 : vector<32xf32> to vector<32x1xf32>
    %cst_15 = arith.constant 1.000000e+00 : f32
    %38 = vector.broadcast %cst_15 : f32 to vector<32x1xf32>
    %39 = arith.maximumf %37, %38 : vector<32x1xf32>
    %cst_16 = arith.constant 1.000000e+00 : f32
    %40 = vector.broadcast %cst_16 : f32 to vector<32x1xf32>
    %41 = arith.divf %40, %39 : vector<32x1xf32>
    %42 = vector.broadcast %41 : vector<32x1xf32> to vector<32x32xf32>
    %43 = arith.mulf %35, %42 : vector<32x32xf32>
    %c0_17 = arith.constant 0 : index
    %c0_18 = arith.constant 0 : index
    %44 = vector.load %arg6[%c0_17, %c0_18] : memref<32x32xf32, #tpu.memory_space<vmem>>, vector<32x32xf32>
    tpu.vector_store %arg6[%c0_17, %c0_18], %43 {strides = array<i32>} : memref<32x32xf32, #tpu.memory_space<vmem>>, vector<32x32xf32>,
    return
  }
  func.func @transform_0(%arg0: i32) -> (i32, i32) {
    %c0_i32 = arith.constant 0 : i32
    %c0_i32_0 = arith.constant 0 : i32
    return %arg0, %c0_i32 : i32, i32
  }
  func.func @transform_1(%arg0: i32) -> (i32, i32) {
    %c0_i32 = arith.constant 0 : i32
    %c0_i32_0 = arith.constant 0 : i32
    return %arg0, %c0_i32 : i32, i32
  }
  func.func @transform_2(%arg0: i32) -> (i32, i32) {
    %c0_i32 = arith.constant 0 : i32
    %c0_i32_0 = arith.constant 0 : i32
    %c0_i32_1 = arith.constant 0 : i32
    return %c0_i32, %c0_i32_0 : i32, i32
  }
  func.func @transform_3(%arg0: i32) -> (i32, i32) {
    %c0_i32 = arith.constant 0 : i32
    %c0_i32_0 = arith.constant 0 : i32
    %c0_i32_1 = arith.constant 0 : i32
    return %c0_i32, %c0_i32_0 : i32, i32
  }
  func.func @transform_4(%arg0: i32) -> (i32, i32) {
    %c0_i32 = arith.constant 0 : i32
    %c0_i32_0 = arith.constant 0 : i32
    %c0_i32_1 = arith.constant 0 : i32
    return %c0_i32, %c0_i32_0 : i32, i32
  }
  func.func @transform_5(%arg0: i32) -> (i32, i32) {
    %c0_i32 = arith.constant 0 : i32
    %c0_i32_0 = arith.constant 0 : i32
    return %arg0, %c0_i32 : i32, i32
  }
}

</mosaic_0001>

<bundles_post_ra>
// kernel: triplet_gnn_forward.1
= control target key start
LH: loop header
LB: loop body
LE: loop exit
PB: predicated region body
PF: predicated region fallthrough
CT: control target
= control target key end

     0   :  { %vm225_vm0 = vcmask 1043456   ;;  %vm176_vm1 = vcmask 588800   ;;  %vm446_vm2 = vcmask 261120   ;;  %vm1791_vm3 = vcmask 64512   ;;  %s3496_s3 = inlined_call_operand.vmem [shape: bf16[72,96], index: 3, kind: input, shape index: {}]   ;;  %s3497_s0 = inlined_call_operand.vmem [shape: bf16[256,72], index: 0, kind: input, shape index: {}]   ;;  %s3498_s4 = inlined_call_operand.vmem [shape: f32[1,96], index: 4, kind: input, shape index: {}]   ;;  %s3499_s2 = inlined_call_operand.vmem [shape: f32[128,128], index: 2, kind: input, shape index: {}]   ;;  %s3500_s1 = inlined_call_operand.vmem [shape: f32[32,8], index: 1, kind: input, shape index: {}]   ;;  %s3501_s5 = inlined_call_operand.vmem [shape: f32[32,32], index: 5, kind: output, shape index: {}]  }
   0x1   :  { %v2363_v0 = vld [vmem:[%s3496_s3 + $0x20] ss:$0 sps:$4 sm:$0xff]   ;;  %v2364_v1 = vld [vmem:[%s3496_s3 + $0x18] sm:$0xff]   ;;  %v2365_v3 = vld [vmem:[%s3496_s3 + $0x10] sm:$0xff]   ;;  %vm1945_vm4 = vcmask 1041409   ;;  %vm1948_vm5 = vcmask 1042434  }
   0x2   :  { %2344 = vmatprep.subr.msk.bf16.mxu0 %vm225_vm0, %v2363_v0  ;;  %v227_v2 = vsel %vm225_vm0, %v2363_v0, 0  ;;  %v2368_v4 = vld [vmem:[%s3497_s0] sm:$0xff]   ;;  %v2366_v5 = vld [vmem:[%s3496_s3 + $0x8] sm:$0xff]   ;;  %v2370_v8 = vld [vmem:[%s3497_s0 + $0x10] sm:$0xff]   ;;  %vm1951_vm6 = vcmask 1043459   ;;  %vm1954_vm7 = vcmask 1044484  }
   0x3   :  { %2159 = vmatpush3.bf16.msra.mxu0 %v227_v2  ;;  %2168 = vmatprep.mubr.msk.bf16.mxu0 %vm176_vm1, %v2368_v4  ;;  %v2367_v6 = vld [vmem:[%s3496_s3] sm:$0xff]   ;;  %v2369_v7 = vld [vmem:[%s3497_s0 + $0x8] sm:$0xff]   ;;  %v2371_v9 = vld [vmem:[%s3497_s0 + $0x18] sm:$0xff]   ;;  %vm1957_vm8 = vcmask 1045509   ;;  %vm1960_vm9 = vcmask 1046534   ;;  %vm1963_vm10 = vcmask 1047559  }
   0x4   :  { %2160 = vmatprep.subr.bf16.mxu0 %v2364_v1  ;;  %v2372_v10 = vld [vmem:[%s3497_s0 + $0x20] sm:$0xff]   ;;  %v2373_v11 = vld [vmem:[%s3497_s0 + $0x28] sm:$0xff]   ;;  %v2374_v12 = vld [vmem:[%s3497_s0 + $0x30] sm:$0xff]  }
   0x5   :  { %v2375_v13 = vld [vmem:[%s3497_s0 + $0x38] sm:$0xff]   ;;  %v2376_v14 = vld [vmem:[%s3497_s0 + $0x40] sm:$0xff]   ;;  %v2377_v15 = vld [vmem:[%s3497_s0 + $0x48] sm:$0xff]  }
   0x6   :  { %v2378_v16 = vld [vmem:[%s3497_s0 + $0x50] sm:$0xff]   ;;  %v2379_v17 = vld [vmem:[%s3497_s0 + $0x58] sm:$0xff]   ;;  %v2380_v18 = vld [vmem:[%s3497_s0 + $0x60] sm:$0xff]  }
   0x7   :  { %2161 = vmatpush3.bf16.msra.mxu0 %v2364_v1  ;;  %v2381_v19 = vld [vmem:[%s3497_s0 + $0x68] sm:$0xff]   ;;  %v2382_v20 = vld [vmem:[%s3497_s0 + $0x70] sm:$0xff]   ;;  %v2383_v21 = vld [vmem:[%s3497_s0 + $0x78] sm:$0xff]   ;;  %s2520_s0 = smov 96  }
   0x8   :  { %2162 = vmatprep.subr.bf16.mxu0 %v2365_v3  ;;  %v2634_v22 = vld [vmem:[%s3498_s4] ss:$0 sm:$0xff]  ;;  %s2521_s4 = smov 64  }
   0xb   :  { %2163 = vmatpush3.bf16.msra.mxu0 %v2365_v3 }
   0xc   :  { %2164 = vmatprep.subr.bf16.mxu0 %v2366_v5 }
   0xf   :  { %2165 = vmatpush3.bf16.msra.mxu0 %v2366_v5 }
  0x10   :  { %2166 = vmatprep.subr.bf16.mxu0 %v2367_v6 }
  0x13   :  { %2167 = vmatpush3.bf16.msra.mxu0 %v2367_v6 }
  0x16   :  { %2169 = vmatmul.mubr.msk.bf16.vlgmr.msra.gmra.mxu0 %vm176_vm1, %v2369_v7 }
  0x17   :  { %2172 = vmatprep.mubr.msk.bf16.mxu0 %vm176_vm1, %v2370_v8 }
  0x1e   :  { %2173 = vmatmul.mubr.msk.bf16.gmra.mxu0 %vm176_vm1, %v2371_v9 }
  0x1f   :  { %2176 = vmatprep.mubr.msk.bf16.mxu0 %vm176_vm1, %v2372_v10 }
  0x26   :  { %2177 = vmatmul.mubr.msk.bf16.gmra.mxu0 %vm176_vm1, %v2373_v11 }
  0x27   :  { %2180 = vmatprep.mubr.msk.bf16.mxu0 %vm176_vm1, %v2374_v12 }
  0x2e   :  { %2181 = vmatmul.mubr.msk.bf16.gmra.mxu0 %vm176_vm1, %v2375_v13 }
  0x2f   :  { %2184 = vmatprep.mubr.msk.bf16.mxu0 %vm176_vm1, %v2376_v14 }
  0x36   :  { %2185 = vmatmul.mubr.msk.bf16.gmra.mxu0 %vm176_vm1, %v2377_v15 }
  0x37   :  { %2188 = vmatprep.mubr.msk.bf16.mxu0 %vm176_vm1, %v2378_v16 }
  0x3e   :  { %2189 = vmatmul.mubr.msk.bf16.gmra.mxu0 %vm176_vm1, %v2379_v17 }
  0x3f   :  { %2192 = vmatprep.mubr.msk.bf16.mxu0 %vm176_vm1, %v2380_v18 }
  0x46   :  { %2193 = vmatmul.mubr.msk.bf16.gmra.mxu0 %vm176_vm1, %v2381_v19 }
  0x47   :  { %2196 = vmatprep.mubr.msk.bf16.mxu0 %vm176_vm1, %v2382_v20 }
  0x4e   :  { %2197 = vmatmul.mubr.msk.bf16.gmra.mxu0 %vm176_vm1, %v2383_v21 }
  0xd6   :  { %v2170_v23 = vpop.f32.mrf.mxu0 }
  0xd7   :  { %v272_v24 = vadd.f32 %v2170_v23, %v2634_v22 }
  0xd8   :  { %v263_v25 = vpop.f32.mrf.mxu0 }
  0xd9   :  { %v264_v29 = vadd.f32 %v2634_v22, %v263_v25 }
  0xda   :  { %v2171_v26 = vpop.f32.mrf.mxu0 }
  0xdb   :  { %v275_v27 = vadd.f32 %v2171_v26, %v2634_v22 }
  0xdc   :  { %v266_v28 = vpop.f32.mrf.mxu0 }
  0xdd   :  { %v2639_v30 = vpack.c.bf16 %v275_v27, %v272_v24  ;;  %v267_v31 = vadd.f32 %v2634_v22, %v266_v28 }
  0xde   :  { %v2174_v32 = vpop.f32.mrf.mxu0 }
  0xdf   :  { %v2642_v33 = vpack.c.bf16 %v267_v31, %v264_v29  ;;  %v288_v34 = vadd.f32 %v2174_v32, %v2634_v22 }
  0xe0   :  { %v279_v35 = vpop.f32.mrf.mxu0 }
  0xe1   :  { %v280_v36 = vadd.f32 %v2634_v22, %v279_v35  ;;  %2216 = vmatprep.mubr.msk.bf16.mxu1 %vm446_vm2, %v2642_v33 }
  0xe2   :  { %v2175_v37 = vpop.f32.mrf.mxu0 }
  0xe3   :  { %v291_v38 = vadd.f32 %v2175_v37, %v2634_v22 }
  0xe4   :  { %v282_v39 = vpop.f32.mrf.mxu0 }
  0xe5   :  { %v2649_v40 = vpack.c.bf16 %v291_v38, %v288_v34  ;;  %v283_v41 = vadd.f32 %v2634_v22, %v282_v39 }
  0xe6   :  { %v2178_v42 = vpop.f32.mrf.mxu0 }
  0xe7   :  { %v2652_v43 = vpack.c.bf16 %v283_v41, %v280_v36  ;;  %v304_v18 = vadd.f32 %v2178_v42, %v2634_v22 }
  0xe8   :  { %v295_v44 = vpop.f32.mrf.mxu0 }
  0xe9   :  { %v296_v25 = vadd.f32 %v2634_v22, %v295_v44 }
  0xea   :  { %v2179_v45 = vpop.f32.mrf.mxu0 }
  0xeb   :  { %v307_v14 = vadd.f32 %v2179_v45, %v2634_v22 }
  0xec   :  { %v298_v46 = vpop.f32.mrf.mxu0 }
  0xed   :  { %v2685_v21 = vpack.c.bf16 %v307_v14, %v304_v18  ;;  %v299_v23 = vadd.f32 %v2634_v22, %v298_v46 }
  0xee   :  { %v2182_v47 = vpop.f32.mrf.mxu0 }
  0xef   :  { %v320_v50 = vadd.f32 %v2182_v47, %v2634_v22  ;;  %v2697_v28 = vpack.c.bf16 %v299_v23, %v296_v25 }
  0xf0   :  { %v311_v48 = vpop.f32.mrf.mxu0 }
  0xf1   :  { %v312_v56 = vadd.f32 %v2634_v22, %v311_v48 }
  0xf2   :  { %v2183_v49 = vpop.f32.mrf.mxu0 }
  0xf3   :  { %v323_v51 = vadd.f32 %v2183_v49, %v2634_v22 }
  0xf4   :  { %v314_v52 = vpop.f32.mrf.mxu0 }
  0xf5   :  { %v2656_v53 = vpack.c.bf16 %v323_v51, %v320_v50  ;;  %v315_v54 = vadd.f32 %v2634_v22, %v314_v52 }
  0xf6   :  { %v2186_v55 = vpop.f32.mrf.mxu0 }
  0xf7   :  { %444 = vrot.lane.b32.xlu0 %v2656_v53, %s2520_s0  ;;  %v2662_v58 = vpack.c.bf16 %v315_v54, %v312_v56  ;;  %v336_v41 = vadd.f32 %v2186_v55, %v2634_v22 }
  0xf8   :  { %v327_v57 = vpop.f32.mrf.mxu0 }
  0xf9   :  { %v328_v61 = vadd.f32 %v2634_v22, %v327_v57 }
  0xfa   :  { %v2187_v59 = vpop.f32.mrf.mxu0 }
  0xfb   :  { %442 = vrot.lane.b32.xlu0 %v2662_v58, %s2520_s0  ;;  %v339_v38 = vadd.f32 %v2187_v59, %v2634_v22 }
  0xfc   :  { %v330_v60 = vpop.f32.mrf.mxu0 }
  0xfd   :  { %v331_v62 = vadd.f32 %v2634_v22, %v330_v60  ;;  %v2726_v42 = vpack.c.bf16 %v339_v38, %v336_v41  ;;  %v2886_v41 = vld [vmem:[%s3499_s2 + $0x38] sm:$0xff] }
  0xfe   :  { %v2190_v63 = vpop.f32.mrf.mxu0 }
  0xff   :  { %v2668_v0 = vpack.c.bf16 %v331_v62, %v328_v61  ;;  %v352_v34 = vadd.f32 %v2190_v63, %v2634_v22 }
 0x100   :  { %v343_v1 = vpop.f32.mrf.mxu0 }
 0x101   :  { %2248 = vmatprep.mubr.msk.bf16.mxu0 %vm446_vm2, %v2668_v0  ;;  %v344_v37 = vadd.f32 %v2634_v22, %v343_v1 }
 0x102   :  { %v2191_v2 = vpop.f32.mrf.mxu0 }
 0x103   :  { %v355_v31 = vadd.f32 %v2191_v2, %v2634_v22 }
 0x104   :  { %v346_v3 = vpop.f32.mrf.mxu0 }
 0x105   :  { %v2710_v35 = vpack.c.bf16 %v355_v31, %v352_v34  ;;  %v347_v36 = vadd.f32 %v2634_v22, %v346_v3  ;;  %v2868_v31 = vld [vmem:[%s3499_s2 + $0x18] sm:$0xff] }
 0x106   :  { %v2194_v4 = vpop.f32.mrf.mxu0 }
 0x107   :  { %v368_v24 = vadd.f32 %v2194_v4, %v2634_v22  ;;  %v2719_v39 = vpack.c.bf16 %v347_v36, %v344_v37 }
 0x108   :  { %v359_v5 = vpop.f32.mrf.mxu0 }
 0x109   :  { %v360_v29 = vadd.f32 %v2634_v22, %v359_v5 }
 0x10a   :  { %v2195_v6 = vpop.f32.mrf.mxu0 }
 0x10b   :  { %v371_v19 = vadd.f32 %v2195_v6, %v2634_v22 }
 0x10c   :  { %v362_v7 = vpop.f32.mrf.mxu0 }
 0x10d   :  { %v2692_v26 = vpack.c.bf16 %v371_v19, %v368_v24  ;;  %v363_v27 = vadd.f32 %v2634_v22, %v362_v7 }
 0x10e   :  { %v2198_v8 = vpop.f32.mrf.mxu0 }
 0x10f   :  { %v384_v11 = vadd.f32 %v2198_v8, %v2634_v22  ;;  %v2703_v32 = vpack.c.bf16 %v363_v27, %v360_v29 }
 0x110   :  { %v375_v9 = vpop.f32.mrf.mxu0 }
 0x111   :  { %v376_v15 = vadd.f32 %v2634_v22, %v375_v9 }
 0x112   :  { %v2199_v10 = vpop.f32.mrf.mxu0 }
 0x113   :  { %v387_v12 = vadd.f32 %v2199_v10, %v2634_v22 }
 0x114   :  { %v378_v13 = vpop.f32.mrf.mxu0 }
 0x115   :  { %v2676_v16 = vpack.c.bf16 %v387_v12, %v384_v11  ;;  %v379_v17 = vadd.f32 %v2634_v22, %v378_v13 }
 0x117   :  { %v2681_v20 = vpack.c.bf16 %v379_v17, %v376_v15  ;;  %614 = vrot.lane.b32.xlu1 %v2676_v16, %s2520_s0 }
 0x119   :  { %612 = vrot.lane.b32.xlu0 %v2681_v20, %s2520_s0 }
 0x11b   :  { %440 = vrot.lane.b32.xlu1 %v2685_v21, %s2520_s0 }
 0x11d   :  { %610 = vrot.lane.b32.xlu0 %v2692_v26, %s2520_s0 }
 0x11f   :  { %438 = vrot.lane.b32.xlu1 %v2697_v28, %s2520_s0 }
 0x121   :  { %608 = vrot.lane.b32.xlu0 %v2703_v32, %s2520_s0 }
 0x123   :  { %436 = vrot.lane.b32.xlu1 %v2649_v40, %s2520_s0 }
 0x125   :  { %606 = vrot.lane.b32.xlu0 %v2710_v35, %s2520_s0 }
 0x127   :  { %434 = vrot.lane.b32.xlu1 %v2652_v43, %s2520_s0 }
 0x129   :  { %604 = vrot.lane.b32.xlu0 %v2719_v39, %s2520_s0 }
 0x12b   :  { %432 = vrot.lane.b32.xlu1 %v2639_v30, %s2520_s0 }
 0x12d   :  { %602 = vrot.lane.b32.xlu0 %v2726_v42, %s2520_s0 }
 0x12f   :  { %430 = vrot.lane.b32.xlu1 %v2642_v33, %s2520_s0 }
 0x131   :  { %1075 = vrot.lane.b32.xlu0 %v2685_v21, %s2521_s4 }
 0x133   :  { %600 = vrot.lane.b32.xlu1 %v2668_v0, %s2520_s0 }
 0x135   :  { %1200 = vrot.lane.b32.xlu0 %v2676_v16, %s2521_s4 }
 0x137   :  { %1079 = vrot.lane.b32.xlu1 %v2656_v53, %s2521_s4 }
 0x139   :  { %1071 = vrot.lane.b32.xlu0 %v2649_v40, %s2521_s4 }
 0x13b   :  { %1077 = vrot.lane.b32.xlu1 %v2662_v58, %s2521_s4 }
 0x13d   :  { %1069 = vrot.lane.b32.xlu0 %v2652_v43, %s2521_s4 }
 0x13f   :  { %1073 = vrot.lane.b32.xlu1 %v2697_v28, %s2521_s4 }
 0x141   :  { %1067 = vrot.lane.b32.xlu0 %v2639_v30, %s2521_s4 }
 0x143   :  { %1196 = vrot.lane.b32.xlu1 %v2692_v26, %s2521_s4 }
 0x145   :  { %1065 = vrot.lane.b32.xlu0 %v2642_v33, %s2521_s4 }
 0x147   :  { %1194 = vrot.lane.b32.xlu1 %v2703_v32, %s2521_s4 }
 0x14b   :  { %1192 = vrot.lane.b32.xlu1 %v2710_v35, %s2521_s4 }
 0x14f   :  { %1198 = vrot.lane.b32.xlu1 %v2681_v20, %s2521_s4 }
 0x169   :  { %v445_v22 = vpop.permute.xlu0 %444 }
 0x16a   :  { %2345 = vmatprep.subr.msk.bf16.mxu1 %vm446_vm2, %v445_v22  ;;  %v493_v44 = vsel %vm446_vm2, %v445_v22, 0 }
 0x16b   :  { %2201 = vmatpush3.bf16.xpose.msra.mxu1 %v493_v44  ;;  %v2895_v44 = vld [vmem:[%s3499_s2 + $0x20] sm:$0xff] }
 0x16d   :  { %v443_v45 = vpop.permute.xlu0 %442 }
 0x16e   :  { %2346 = vmatprep.subr.msk.bf16.mxu1 %vm446_vm2, %v443_v45  ;;  %v490_v33 = vsel %vm446_vm2, %v443_v45, 0 }
 0x173   :  { %2203 = vmatpush3.bf16.xpose.msra.mxu1 %v490_v33 }
 0x189   :  { %v615_v46 = vpop.permute.xlu1 %614 }
 0x18a   :  { %2353 = vmatprep.subr.msk.bf16.mxu0 %vm446_vm2, %v615_v46  ;;  %v662_v47 = vsel %vm446_vm2, %v615_v46, 0 }
 0x18b   :  { %2233 = vmatpush3.bf16.xpose.msra.mxu0 %v662_v47  ;;  %v613_v48 = vpop.permute.xlu0 %612 }
 0x18c   :  { %2354 = vmatprep.subr.msk.bf16.mxu0 %vm446_vm2, %v613_v48  ;;  %v659_v52 = vsel %vm446_vm2, %v613_v48, 0  ;;  %v411_v48 = vld [vmem:[%s3499_s2 + $0x28] sm:$0xff] }
 0x18d   :  { %v441_v49 = vpop.permute.xlu1 %440 }
 0x18e   :  { %2347 = vmatprep.subr.msk.bf16.mxu1 %vm446_vm2, %v441_v49  ;;  %v487_v50 = vsel %vm446_vm2, %v441_v49, 0 }
 0x18f   :  { %2205 = vmatpush3.bf16.xpose.msra.mxu1 %v487_v50  ;;  %v611_v54 = vpop.permute.xlu0 %610 }
 0x190   :  { %v656_v59 = vsel %vm446_vm2, %v611_v54, 0 }
 0x191   :  { %v439_v51 = vpop.permute.xlu1 %438 }
 0x192   :  { %2348 = vmatprep.subr.msk.bf16.mxu1 %vm446_vm2, %v439_v51  ;;  %v484_v56 = vsel %vm446_vm2, %v439_v51, 0  ;;  %v416_v51 = vld [vmem:[%s3499_s2 + $0x50] sm:$0xff] }
 0x193   :  { %2235 = vmatpush3.bf16.xpose.msra.mxu0 %v659_v52  ;;  %v609_v60 = vpop.permute.xlu0 %608 }
 0x194   :  { %2355 = vmatprep.subr.msk.bf16.mxu0 %vm446_vm2, %v611_v54  ;;  %v653_v1 = vsel %vm446_vm2, %v609_v60, 0 }
 0x195   :  { %v437_v55 = vpop.permute.xlu1 %436 }
 0x196   :  { %v481_v62 = vsel %vm446_vm2, %v437_v55, 0 }
 0x197   :  { %2207 = vmatpush3.bf16.xpose.msra.mxu1 %v484_v56  ;;  %v607_v2 = vpop.permute.xlu0 %606 }
 0x198   :  { %2349 = vmatprep.subr.msk.bf16.mxu1 %vm446_vm2, %v437_v55  ;;  %v650_v6 = vsel %vm446_vm2, %v607_v2, 0 }
 0x199   :  { %v435_v57 = vpop.permute.xlu1 %434 }
 0x19a   :  { %v478_v4 = vsel %vm446_vm2, %v435_v57, 0 }
 0x19b   :  { %2237 = vmatpush3.bf16.xpose.msra.mxu0 %v656_v59  ;;  %v605_v7 = vpop.permute.xlu0 %604  ;;  %v417_v59 = vld [vmem:[%s3499_s2 + $0x58] sm:$0xff] }
 0x19c   :  { %2356 = vmatprep.subr.msk.bf16.mxu0 %vm446_vm2, %v609_v60  ;;  %v647_v10 = vsel %vm446_vm2, %v605_v7, 0 }
 0x19d   :  { %v433_v61 = vpop.permute.xlu1 %432 }
 0x19e   :  { %v475_v9 = vsel %vm446_vm2, %v433_v61, 0 }
 0x19f   :  { %2209 = vmatpush3.bf16.xpose.msra.mxu1 %v481_v62  ;;  %v603_v11 = vpop.permute.xlu0 %602 }
 0x1a0   :  { %2350 = vmatprep.subr.msk.bf16.mxu1 %vm446_vm2, %v435_v57  ;;  %v644_v17 = vsel %vm446_vm2, %v603_v11, 0 }
 0x1a1   :  { %v431_v63 = vpop.permute.xlu1 %430 }
 0x1a2   :  { %v472_v13 = vsel %vm446_vm2, %v431_v63, 0 }
 0x1a3   :  { %2239 = vmatpush3.bf16.xpose.msra.mxu0 %v653_v1  ;;  %v1076_v14 = vpop.permute.xlu0 %1075 }
 0x1a4   :  { %2357 = vmatprep.subr.msk.bf16.mxu0 %vm446_vm2, %v607_v2 }
 0x1a5   :  { %v601_v3 = vpop.permute.xlu1 %600 }
 0x1a6   :  { %v641_v23 = vsel %vm446_vm2, %v601_v3, 0 }
 0x1a7   :  { %2211 = vmatpush3.bf16.xpose.msra.mxu1 %v478_v4  ;;  %v2797_v18 = vpop.permute.xlu0 %1200 }
 0x1a8   :  { %2351 = vmatprep.subr.msk.bf16.mxu1 %vm446_vm2, %v433_v61  ;;  %v414_v61 = vld [vmem:[%s3499_s2 + $0x40] sm:$0xff] }
 0x1a9   :  { %v1080_v5 = vpop.permute.xlu1 %1079 }
 0x1ab   :  { %2241 = vmatpush3.bf16.xpose.msra.mxu0 %v650_v6  ;;  %v1072_v24 = vpop.permute.xlu0 %1071  ;;  %v420_v6 = vld [vmem:[%s3499_s2 + $0x70] sm:$0xff] }
 0x1ac   :  { %2358 = vmatprep.subr.msk.bf16.mxu0 %vm446_vm2, %v605_v7 }
 0x1ad   :  { %v1078_v8 = vpop.permute.xlu1 %1077 }
 0x1af   :  { %2213 = vmatpush3.bf16.xpose.msra.mxu1 %v475_v9 }
 0x1b0   :  { %2352 = vmatprep.subr.msk.bf16.mxu1 %vm446_vm2, %v431_v63 }
 0x1b1   :  { %v1074_v12 = vpop.permute.xlu1 %1073 }
 0x1b3   :  { %2243 = vmatpush3.bf16.xpose.msra.mxu0 %v647_v10 }
 0x1b4   :  { %2359 = vmatprep.subr.msk.bf16.mxu0 %vm446_vm2, %v603_v11  ;;  %v421_v11 = vld [vmem:[%s3499_s2 + $0x78] sm:$0xff] }
 0x1b5   :  { %v2791_v15 = vpop.permute.xlu1 %1196 }
 0x1b7   :  { %2215 = vmatpush3.bf16.xpose.msra.mxu1 %v472_v13  ;;  %v418_v13 = vld [vmem:[%s3499_s2 + $0x60] sm:$0xff] }
 0x1b8   :  { %2264 = vmatprep.subr.bf16.mxu1 %v1080_v5 }
 0x1b9   :  { %v2801_v19 = vpop.permute.xlu1 %1194 }
 0x1bb   :  { %2245 = vmatpush3.bf16.xpose.msra.mxu0 %v644_v17 }
 0x1bc   :  { %2360 = vmatprep.subr.msk.bf16.mxu0 %vm446_vm2, %v601_v3  ;;  %v415_v3 = vld [vmem:[%s3499_s2 + $0x48] sm:$0xff] }
 0x1bd   :  { %v2805_v25 = vpop.permute.xlu1 %1192 }
 0x1be   :  { %2217 = vmatmul.mubr.msk.bf16.vlgmr.msra.gmra.mxu1 %vm446_vm2, %v2639_v30  ;;  %v1070_v30 = vpop.permute.xlu0 %1069 }
 0x1bf   :  { %2220 = vmatprep.mubr.msk.bf16.mxu1 %vm446_vm2, %v2652_v43  ;;  %2265 = vmatpush3.bf16.msra.mxu1 %v1080_v5 }
 0x1c0   :  { %2266 = vmatprep.subr.bf16.mxu1 %v1078_v8 }
 0x1c1   :  { %v2815_v43 = vpop.permute.xlu1 %1198 }
 0x1c3   :  { %2247 = vmatpush3.bf16.xpose.msra.mxu0 %v641_v23  ;;  %2267 = vmatpush3.bf16.msra.mxu1 %v1078_v8 }
 0x1c4   :  { %2268 = vmatprep.subr.bf16.mxu1 %v1076_v14  ;;  %2296 = vmatprep.subr.bf16.mxu0 %v2797_v18 }
 0x1c6   :  { %2221 = vmatmul.mubr.msk.bf16.gmra.mxu1 %vm446_vm2, %v2649_v40  ;;  %v1068_v40 = vpop.permute.xlu0 %1067 }
 0x1c7   :  { %2224 = vmatprep.mubr.msk.bf16.mxu1 %vm446_vm2, %v2697_v28  ;;  %2269 = vmatpush3.bf16.msra.mxu1 %v1076_v14 }
 0x1c8   :  { %2270 = vmatprep.subr.bf16.mxu1 %v1074_v12 }
 0x1ca   :  { %2249 = vmatmul.mubr.msk.bf16.vlgmr.msra.gmra.mxu0 %vm446_vm2, %v2726_v42 }
 0x1cb   :  { %2252 = vmatprep.mubr.msk.bf16.mxu0 %vm446_vm2, %v2719_v39  ;;  %2271 = vmatpush3.bf16.msra.mxu1 %v1074_v12 }
 0x1cc   :  { %2297 = vmatpush3.bf16.msra.mxu0 %v2797_v18  ;;  %2272 = vmatprep.subr.bf16.mxu1 %v1072_v24 }
 0x1cd   :  { %2298 = vmatprep.subr.bf16.mxu0 %v2815_v43 }
 0x1ce   :  { %2225 = vmatmul.mubr.msk.bf16.gmra.mxu1 %vm446_vm2, %v2685_v21 }
 0x1cf   :  { %2228 = vmatprep.mubr.msk.bf16.mxu1 %vm446_vm2, %v2662_v58  ;;  %2273 = vmatpush3.bf16.msra.mxu1 %v1072_v24  ;;  %v1066_v58 = vpop.permute.xlu0 %1065 }
 0x1d0   :  { %2299 = vmatpush3.bf16.msra.mxu0 %v2815_v43  ;;  %2274 = vmatprep.subr.bf16.mxu1 %v1070_v30 }
 0x1d1   :  { %2300 = vmatprep.subr.bf16.mxu0 %v2791_v15 }
 0x1d2   :  { %2253 = vmatmul.mubr.msk.bf16.gmra.mxu0 %vm446_vm2, %v2710_v35  ;;  %v2877_v35 = vld [vmem:[%s3499_s2 + $0x30] sm:$0xff] }
 0x1d3   :  { %2256 = vmatprep.mubr.msk.bf16.mxu0 %vm446_vm2, %v2703_v32  ;;  %2275 = vmatpush3.bf16.msra.mxu1 %v1070_v30  ;;  %v419_v30 = vld [vmem:[%s3499_s2 + $0x68] sm:$0xff] }
 0x1d4   :  { %2301 = vmatpush3.bf16.msra.mxu0 %v2791_v15  ;;  %2276 = vmatprep.subr.bf16.mxu1 %v1068_v40 }
 0x1d5   :  { %2302 = vmatprep.subr.bf16.mxu0 %v2801_v19 }
 0x1d6   :  { %2229 = vmatmul.mubr.msk.bf16.gmra.mxu1 %vm446_vm2, %v2656_v53  ;;  %v2846_v53 = vld [vmem:[%s3499_s2 + $0x10] sm:$0xff] }
 0x1d7   :  { %2277 = vmatpush3.bf16.msra.mxu1 %v1068_v40 }
 0x1d8   :  { %2303 = vmatpush3.bf16.msra.mxu0 %v2801_v19  ;;  %2278 = vmatprep.subr.bf16.mxu1 %v1066_v58 }
 0x1d9   :  { %2304 = vmatprep.subr.bf16.mxu0 %v2805_v25 }
 0x1da   :  { %2257 = vmatmul.mubr.msk.bf16.gmra.mxu0 %vm446_vm2, %v2692_v26 }
 0x1db   :  { %2260 = vmatprep.mubr.msk.bf16.mxu0 %vm446_vm2, %v2681_v20  ;;  %2279 = vmatpush3.bf16.msra.mxu1 %v1066_v58  ;;  %v2854_v20 = vld [vmem:[%s3499_s2] sm:$0xff] }
 0x1dc   :  { %2305 = vmatpush3.bf16.msra.mxu0 %v2805_v25  ;;  %2328 = vmatprep.subr.bf16.mxu1 %v2797_v18 }
 0x1e2   :  { %2261 = vmatmul.mubr.msk.bf16.gmra.mxu0 %vm446_vm2, %v2676_v16  ;;  %v2860_v16 = vld [vmem:[%s3499_s2 + $0x8] sm:$0xff] }
 0x27e   :  { %v2218_v21 = vpop.f32.mrf.mxu1 }
 0x27f   :  { %v2849_v27 = vadd.f32 %v2218_v21, %v2846_v53 }
 0x280   :  { %v529_v26 = vpop.f32.mrf.mxu1 }
 0x281   :  { %765 = vmax.xlane.f32.xlu0 %v2849_v27  ;;  %v2863_v29 = vadd.f32 %v529_v26, %v2854_v20 }
 0x282   :  { %v2219_v28 = vpop.f32.mrf.mxu1 }
 0x283   :  { %v2880_v37 = vadd.f32 %v2219_v28, %v2868_v31 }
 0x284   :  { %v532_v32 = vpop.f32.mrf.mxu1 }
 0x285   :  { %v2871_v34 = vadd.f32 %v532_v32, %v2860_v16  ;;  %761 = vmax.xlane.f32.xlu0 %v2863_v29 }
 0x286   :  { %v2222_v36 = vpop.f32.mrf.mxu1 }
 0x287   :  { %763 = vmax.xlane.f32.xlu1 %v2871_v34  ;;  %v2889_v22 = vadd.f32 %v2222_v36, %v2877_v35 }
 0x288   :  { %v545_v38 = vpop.f32.mrf.mxu1 }
 0x289   :  { %767 = vmax.xlane.f32.xlu0 %v2880_v37  ;;  %v2905_v50 = vadd.f32 %v545_v38, %v2895_v44 }
 0x28a   :  { %v2223_v45 = vpop.f32.mrf.mxu1  ;;  %v2250_v33 = vpop.f32.mrf.mxu0 }
 0x28b   :  { %v2898_v46 = vadd.f32 %v2223_v45, %v2886_v41  ;;  %773 = vmax.xlane.f32.xlu1 %v2889_v22  ;;  %v2960_v26 = vadd.f32 %v2250_v33, %v2846_v53 }
 0x28c   :  { %v548_v47 = vpop.f32.mrf.mxu1  ;;  %v698_v49 = vpop.f32.mrf.mxu0 }
 0x28d   :  { %775 = vmax.xlane.f32.xlu0 %v2898_v46  ;;  %v2911_v55 = vadd.f32 %v548_v47, %v411_v48  ;;  %v2968_v36 = vadd.f32 %v698_v49, %v2854_v20 }
 0x28e   :  { %v2226_v52 = vpop.f32.mrf.mxu1  ;;  %v2251_v54 = vpop.f32.mrf.mxu0 }
 0x28f   :  { %769 = vmax.xlane.f32.xlu1 %v2905_v50  ;;  %v2917_v60 = vadd.f32 %v2226_v52, %v416_v51  ;;  %v2964_v28 = vadd.f32 %v2251_v54, %v2868_v31 }
 0x290   :  { %v561_v56 = vpop.f32.mrf.mxu1  ;;  %v701_v57 = vpop.f32.mrf.mxu0 }
 0x291   :  { %771 = vmax.xlane.f32.xlu0 %v2911_v55  ;;  %v2929_v5 = vadd.f32 %v561_v56, %v414_v61  ;;  %v2972_v38 = vadd.f32 %v701_v57, %v2860_v16 }
 0x292   :  { %v2227_v62 = vpop.f32.mrf.mxu1  ;;  %v2254_v63 = vpop.f32.mrf.mxu0 }
 0x293   :  { %v2923_v1 = vadd.f32 %v2227_v62, %v417_v59  ;;  %781 = vmax.xlane.f32.xlu1 %v2917_v60  ;;  %v2976_v45 = vadd.f32 %v2254_v63, %v2877_v35 }
 0x294   :  { %v564_v2 = vpop.f32.mrf.mxu1  ;;  %v714_v4 = vpop.f32.mrf.mxu0 }
 0x295   :  { %783 = vmax.xlane.f32.xlu0 %v2923_v1  ;;  %v2935_v8 = vadd.f32 %v564_v2, %v415_v3  ;;  %v2984_v33 = vadd.f32 %v714_v4, %v2895_v44 }
 0x296   :  { %v2230_v7 = vpop.f32.mrf.mxu1  ;;  %v2255_v9 = vpop.f32.mrf.mxu0 }
 0x297   :  { %777 = vmax.xlane.f32.xlu1 %v2929_v5  ;;  %v2941_v12 = vadd.f32 %v2230_v7, %v420_v6  ;;  %v2980_v31 = vadd.f32 %v2255_v9, %v2886_v41 }
 0x298   :  { %v577_v10 = vpop.f32.mrf.mxu1  ;;  %v717_v23 = vpop.f32.mrf.mxu0 }
 0x299   :  { %779 = vmax.xlane.f32.xlu0 %v2935_v8  ;;  %v2953_v40 = vadd.f32 %v577_v10, %v418_v13  ;;  %v2987_v16 = vadd.f32 %v717_v23, %v411_v48 }
 0x29a   :  { %v2231_v14 = vpop.f32.mrf.mxu1  ;;  %v2258_v21 = vpop.f32.mrf.mxu0 }
 0x29b   :  { %v2947_v17 = vadd.f32 %v2231_v14, %v421_v11  ;;  %789 = vmax.xlane.f32.xlu1 %v2941_v12  ;;  %v2990_v35 = vadd.f32 %v2258_v21, %v416_v51 }
 0x29c   :  { %v580_v24 = vpop.f32.mrf.mxu1  ;;  %v730_v32 = vpop.f32.mrf.mxu0 }
 0x29d   :  { %791 = vmax.xlane.f32.xlu0 %v2947_v17  ;;  %v2956_v58 = vadd.f32 %v580_v24, %v419_v30  ;;  %v2996_v52 = vadd.f32 %v730_v32, %v414_v61 }
 0x29e   :  { %v2259_v53 = vpop.f32.mrf.mxu0 }
 0x29f   :  { %785 = vmax.xlane.f32.xlu1 %v2953_v40  ;;  %v2993_v49 = vadd.f32 %v2259_v53, %v417_v59 }
 0x2a0   :  { %v733_v20 = vpop.f32.mrf.mxu0 }
 0x2a1   :  { %787 = vmax.xlane.f32.xlu0 %v2956_v58  ;;  %v2999_v44 = vadd.f32 %v733_v20, %v415_v3 }
 0x2a2   :  { %v2262_v47 = vpop.f32.mrf.mxu0 }
 0x2a3   :  { %797 = vmax.xlane.f32.xlu1 %v2960_v26  ;;  %v3002_v54 = vadd.f32 %v2262_v47, %v420_v6 }
 0x2a4   :  { %v746_v41 = vpop.f32.mrf.mxu0 }
 0x2a5   :  { %799 = vmax.xlane.f32.xlu0 %v2964_v28  ;;  %v3008_v57 = vadd.f32 %v746_v41, %v418_v13 }
 0x2a6   :  { %v2263_v48 = vpop.f32.mrf.mxu0 }
 0x2a7   :  { %793 = vmax.xlane.f32.xlu1 %v2968_v36  ;;  %v3005_v51 = vadd.f32 %v2263_v48, %v421_v11 }
 0x2a8   :  { %v749_v56 = vpop.f32.mrf.mxu0 }
 0x2a9   :  { %795 = vmax.xlane.f32.xlu0 %v2972_v38  ;;  %v3011_v59 = vadd.f32 %v749_v56, %v419_v30 }
 0x2ab   :  { %805 = vmax.xlane.f32.xlu1 %v2976_v45 }
 0x2ad   :  { %807 = vmax.xlane.f32.xlu0 %v2980_v31 }
 0x2af   :  { %801 = vmax.xlane.f32.xlu1 %v2984_v33 }
 0x2b1   :  { %803 = vmax.xlane.f32.xlu0 %v2987_v16 }
 0x2b3   :  { %813 = vmax.xlane.f32.xlu1 %v2990_v35 }
 0x2b5   :  { %815 = vmax.xlane.f32.xlu0 %v2993_v49 }
 0x2b7   :  { %809 = vmax.xlane.f32.xlu1 %v2996_v52 }
 0x2b9   :  { %811 = vmax.xlane.f32.xlu0 %v2999_v44 }
 0x2bb   :  { %821 = vmax.xlane.f32.xlu1 %v3002_v54 }
 0x2bd   :  { %823 = vmax.xlane.f32.xlu0 %v3005_v51 }
 0x2bf   :  { %817 = vmax.xlane.f32.xlu1 %v3008_v57 }
 0x2c1   :  { %819 = vmax.xlane.f32.xlu0 %v3011_v59 }
 0x2d7   :  { %1190 = vrot.lane.b32.xlu0 %v2719_v39, %s2521_s4 }
 0x30a   :  { %v766_v61 = vpop.xlane.xlu0 %765 }
 0x30b   :  { %v827_v62 = vsub.f32 %v2849_v27, %v766_v61 }
 0x30d   :  { %v861_v63 = vmul.f32 1.442695, %v827_v62 }
 0x30e   :  { %v762_v2 = vpop.xlane.xlu0 %761 }
 0x30f   :  { %2384 = vpow2.f32 %v861_v63  ;;  %v825_v3 = vsub.f32 %v2863_v29, %v762_v2 }
 0x310   :  { %v764_v4 = vpop.xlane.xlu1 %763 }
 0x311   :  { %v857_v6 = vmul.f32 1.442695, %v825_v3  ;;  %v826_v9 = vsub.f32 %v2871_v34, %v764_v4 }
 0x312   :  { %v768_v7 = vpop.xlane.xlu0 %767 }
 0x313   :  { %2386 = vpow2.f32 %v857_v6  ;;  %v828_v10 = vsub.f32 %v2880_v37, %v768_v7  ;;  %v859_v23 = vmul.f32 1.442695, %v826_v9 }
 0x314   :  { %v774_v11 = vpop.xlane.xlu1 %773 }
 0x315   :  { %v863_v13 = vmul.f32 1.442695, %v828_v10  ;;  %v831_v39 = vsub.f32 %v2889_v22, %v774_v11 }
 0x316   :  { %v776_v14 = vpop.xlane.xlu0 %775 }
 0x317   :  { %2388 = vpow2.f32 %v863_v13  ;;  %v869_v27 = vmul.f32 1.442695, %v831_v39  ;;  %v832_v29 = vsub.f32 %v2898_v46, %v776_v14 }
 0x318   :  { %v770_v24 = vpop.xlane.xlu1 %769 }
 0x319   :  { %2390 = vpow2.f32 %v869_v27  ;;  %v829_v30 = vsub.f32 %v2905_v50, %v770_v24  ;;  %v871_v20 = vmul.f32 1.442695, %v832_v29 }
 0x31a   :  { %v772_v21 = vpop.xlane.xlu0 %771  ;;  %2392 = vpow2.f32 %v859_v23 }
 0x31b   :  { %v865_v32 = vmul.f32 1.442695, %v829_v30  ;;  %v830_v34 = vsub.f32 %v2911_v55, %v772_v21 }
 0x31c   :  { %v3025_v37 = vpop.eup %2384  ;;  %v782_v53 = vpop.xlane.xlu1 %781 }
 0x31d   :  { %2394 = vpow2.f32 %v865_v32  ;;  %v867_v22 = vmul.f32 1.442695, %v830_v34  ;;  %v835_v47 = vsub.f32 %v2917_v60, %v782_v53  ;;  %925 = vadd.xlane.f32.xlu0 %v3025_v37 }
 0x31e   :  { %v784_v41 = vpop.xlane.xlu0 %783 }
 0x31f   :  { %2396 = vpow2.f32 %v867_v22  ;;  %v877_v46 = vmul.f32 1.442695, %v835_v47  ;;  %v836_v56 = vsub.f32 %v2923_v1, %v784_v41 }
 0x320   :  { %v3029_v48 = vpop.eup %2386  ;;  %v778_v50 = vpop.xlane.xlu1 %777  ;;  %2398 = vpow2.f32 %v871_v20 }
 0x321   :  { %v833_v55 = vsub.f32 %v2929_v5, %v778_v50  ;;  %921 = vadd.xlane.f32.xlu0 %v3029_v48  ;;  %2400 = vpow2.f32 %v877_v46  ;;  %v879_v3 = vmul.f32 1.442695, %v836_v56 }
 0x322   :  { %v780_v61 = vpop.xlane.xlu0 %779 }
 0x323   :  { %v873_v62 = vmul.f32 1.442695, %v833_v55  ;;  %v834_v60 = vsub.f32 %v2935_v8, %v780_v61 }
 0x324   :  { %v3035_v63 = vpop.eup %2388  ;;  %v790_v2 = vpop.xlane.xlu1 %789 }
 0x325   :  { %2402 = vpow2.f32 %v873_v62  ;;  %v875_v4 = vmul.f32 1.442695, %v834_v60  ;;  %v839_v6 = vsub.f32 %v2941_v12, %v790_v2  ;;  %927 = vadd.xlane.f32.xlu0 %v3035_v63 }
 0x326   :  { %v3039_v1 = vpop.eup %2390  ;;  %v792_v5 = vpop.xlane.xlu0 %791 }
 0x327   :  { %2404 = vpow2.f32 %v875_v4  ;;  %v885_v7 = vmul.f32 1.442695, %v839_v6  ;;  %933 = vadd.xlane.f32.xlu1 %v3039_v1  ;;  %v3042_v9 = vpop.eup %2392  ;;  %v840_v10 = vsub.f32 %v2947_v17, %v792_v5 }
 0x328   :  { %v786_v8 = vpop.xlane.xlu1 %785  ;;  %2406 = vpow2.f32 %v879_v3 }
 0x329   :  { %v837_v11 = vsub.f32 %v2953_v40, %v786_v8  ;;  %923 = vadd.xlane.f32.xlu0 %v3042_v9  ;;  %2408 = vpow2.f32 %v885_v7  ;;  %v887_v24 = vmul.f32 1.442695, %v840_v10 }
 0x32a   :  { %v3047_v12 = vpop.eup %2394  ;;  %v788_v13 = vpop.xlane.xlu0 %787 }
 0x32b   :  { %v881_v39 = vmul.f32 1.442695, %v837_v11  ;;  %v838_v14 = vsub.f32 %v2956_v58, %v788_v13  ;;  %929 = vadd.xlane.f32.xlu1 %v3047_v12 }
 0x32c   :  { %v3051_v23 = vpop.eup %2396  ;;  %v798_v27 = vpop.xlane.xlu1 %797 }
 0x32d   :  { %2410 = vpow2.f32 %v881_v39  ;;  %v883_v29 = vmul.f32 1.442695, %v838_v14  ;;  %v843_v17 = vsub.f32 %v2960_v26, %v798_v27  ;;  %931 = vadd.xlane.f32.xlu0 %v3051_v23  ;;  %v3055_v40 = vpop.eup %2398 }
 0x32e   :  { %v800_v30 = vpop.xlane.xlu0 %799  ;;  %v3058_v21 = vpop.eup %2400 }
 0x32f   :  { %2412 = vpow2.f32 %v883_v29  ;;  %935 = vadd.xlane.f32.xlu1 %v3055_v40  ;;  %v893_v32 = vmul.f32 1.442695, %v843_v17  ;;  %v844_v47 = vsub.f32 %v2964_v28, %v800_v30 }
 0x330   :  { %v794_v58 = vpop.xlane.xlu1 %793  ;;  %2414 = vpow2.f32 %v887_v24 }
 0x331   :  { %v841_v34 = vsub.f32 %v2968_v36, %v794_v58  ;;  %941 = vadd.xlane.f32.xlu0 %v3058_v21  ;;  %2416 = vpow2.f32 %v893_v32  ;;  %v895_v62 = vmul.f32 1.442695, %v844_v47 }
 0x332   :  { %v3062_v53 = vpop.eup %2402  ;;  %v796_v26 = vpop.xlane.xlu0 %795 }
 0x333   :  { %v842_v20 = vsub.f32 %v2972_v38, %v796_v26  ;;  %937 = vadd.xlane.f32.xlu1 %v3062_v53  ;;  %v889_v46 = vmul.f32 1.442695, %v841_v34 }
 0x334   :  { %v3066_v22 = vpop.eup %2404  ;;  %v806_v41 = vpop.xlane.xlu1 %805 }
 0x335   :  { %v891_v50 = vmul.f32 1.442695, %v842_v20  ;;  %v847_v56 = vsub.f32 %v2976_v45, %v806_v41  ;;  %939 = vadd.xlane.f32.xlu0 %v3066_v22  ;;  %v3071_v36 = vpop.eup %2406 }
 0x336   :  { %v808_v55 = vpop.xlane.xlu0 %807  ;;  %v3074_v38 = vpop.eup %2408 }
 0x337   :  { %2418 = vpow2.f32 %v891_v50  ;;  %v901_v61 = vmul.f32 1.442695, %v847_v56  ;;  %943 = vadd.xlane.f32.xlu1 %v3071_v36  ;;  %v848_v5 = vsub.f32 %v2980_v31, %v808_v55 }
 0x338   :  { %v802_v60 = vpop.xlane.xlu1 %801  ;;  %2420 = vpow2.f32 %v889_v46 }
 0x339   :  { %v845_v28 = vsub.f32 %v2984_v33, %v802_v60  ;;  %949 = vadd.xlane.f32.xlu0 %v3074_v38  ;;  %2422 = vpow2.f32 %v901_v61  ;;  %v903_v39 = vmul.f32 1.442695, %v848_v5 }
 0x33a   :  { %v3078_v2 = vpop.eup %2410  ;;  %v804_v45 = vpop.xlane.xlu0 %803  ;;  %2424 = vpow2.f32 %v895_v62 }
 0x33b   :  { %v846_v3 = vsub.f32 %v2987_v16, %v804_v45  ;;  %945 = vadd.xlane.f32.xlu1 %v3078_v2  ;;  %v897_v7 = vmul.f32 1.442695, %v845_v28 }
 0x33c   :  { %v3082_v4 = vpop.eup %2412  ;;  %v814_v6 = vpop.xlane.xlu1 %813 }
 0x33d   :  { %v899_v8 = vmul.f32 1.442695, %v846_v3  ;;  %v851_v33 = vsub.f32 %v2990_v35, %v814_v6  ;;  %947 = vadd.xlane.f32.xlu0 %v3082_v4  ;;  %v3087_v10 = vpop.eup %2414 }
 0x33e   :  { %v816_v11 = vpop.xlane.xlu0 %815  ;;  %v3091_v27 = vpop.eup %2416 }
 0x33f   :  { %2426 = vpow2.f32 %v899_v8  ;;  %v909_v13 = vmul.f32 1.442695, %v851_v33  ;;  %951 = vadd.xlane.f32.xlu1 %v3087_v10  ;;  %v852_v17 = vsub.f32 %v2993_v49, %v816_v11  ;;  %v3156_v33 = vld [vmem:[%s3500_s1] sm:$0xff] }
 0x340   :  { %v810_v16 = vpop.xlane.xlu1 %809  ;;  %2428 = vpow2.f32 %v897_v7  ;;  %v1792_v11 = vsel %vm1791_vm3, %v3156_v33, 0.0 }
 0x341   :  { %v849_v14 = vsub.f32 %v2996_v52, %v810_v16  ;;  %2430 = vpow2.f32 %v909_v13  ;;  %v911_v26 = vmul.f32 1.442695, %v852_v17  ;;  %v3162_v13 = vld [vmem:[%s3500_s1 + $0x10] sm:$0xff] }
 0x342   :  { %v812_v31 = vpop.xlane.xlu0 %811  ;;  %2432 = vpow2.f32 %v903_v39  ;;  %v1311_v39 = vlaneseq }
 0x343   :  { %v850_v35 = vsub.f32 %v2999_v44, %v812_v31  ;;  %957 = vadd.xlane.f32.xlu1 %v3091_v27  ;;  %v905_v30 = vmul.f32 1.442695, %v849_v14  ;;  %v3174_v14 = vld [vmem:[%s3500_s1 + $0x8] sm:$0xff] }
 0x344   :  { %v3095_v24 = vpop.eup %2418  ;;  %v822_v29 = vpop.xlane.xlu1 %821  ;;  %v3176_v31 = vshrl.u32 %v1311_v39, 7 }
 0x345   :  { %v907_v58 = vmul.f32 1.442695, %v850_v35  ;;  %955 = vadd.xlane.f32.xlu0 %v3095_v24  ;;  %v3099_v32 = vpop.eup %2420  ;;  %v855_v20 = vsub.f32 %v3002_v54, %v822_v29  ;;  %v1795_v35 = vsel %vm1791_vm3, %v3174_v14, 0.0 }
 0x346   :  { %v824_v52 = vpop.xlane.xlu0 %823  ;;  %v3102_v34 = vpop.eup %2422  ;;  %v1320_v29 = vsub.s32 1, %v3176_v31 }
 0x347   :  { %2434 = vpow2.f32 %v907_v58  ;;  %953 = vadd.xlane.f32.xlu1 %v3099_v32  ;;  %v3104_v44 = vpop.eup %2424  ;;  %v917_v46 = vmul.f32 1.442695, %v855_v20  ;;  %v856_v61 = vsub.f32 %v3005_v51, %v824_v52  ;;  %v1327_v52 = vsub.s32 2, %v3176_v31 }
 0x348   :  { %2436 = vpow2.f32 %v905_v30  ;;  %v818_v49 = vpop.xlane.xlu1 %817  ;;  %v1321_v17 = vrot.slane %v3156_v33, %v1320_v29  ;;  %v1433_v58 = vrot.slane %v3162_v13, %v1320_v29 }
 0x349   :  { %965 = vadd.xlane.f32.xlu0 %v3102_v34  ;;  %2438 = vpow2.f32 %v911_v26  ;;  %v853_v50 = vsub.f32 %v3008_v57, %v818_v49  ;;  %v919_v28 = vmul.f32 1.442695, %v856_v61  ;;  %v1328_v20 = vrot.slane %v3156_v33, %v1327_v52 }
 0x34a   :  { %v820_v47 = vpop.xlane.xlu0 %819  ;;  %2440 = vpow2.f32 %v917_v46  ;;  %v1377_v49 = vrot.slane %v3174_v14, %v1320_v29  ;;  %v1313_v61 = vsub.s32 0, %v3176_v31 }
 0x34b   :  { %959 = vadd.xlane.f32.xlu1 %v3104_v44  ;;  %v913_v62 = vmul.f32 1.442695, %v853_v50  ;;  %v854_v45 = vsub.f32 %v3011_v59, %v820_v47  ;;  %v1440_v50 = vrot.slane %v3162_v13, %v1327_v52 }
 0x34c   :  { %v3109_v41 = vpop.eup %2426  ;;  %v1370_v39 = vrot.slane %v3174_v14, %v1313_v61 }
 0x34d   :  { %963 = vadd.xlane.f32.xlu0 %v3109_v41  ;;  %v3113_v56 = vpop.eup %2428  ;;  %2442 = vpow2.f32 %v913_v62  ;;  %v915_v51 = vmul.f32 1.442695, %v854_v45 }
 0x34e   :  { %v3115_v55 = vpop.permute.xlu0 %1190  ;;  %v3119_v54 = vpop.eup %2430  ;;  %2444 = vpow2.f32 %v919_v28 }
 0x34f   :  { %961 = vadd.xlane.f32.xlu1 %v3113_v56  ;;  %2306 = vmatprep.subr.bf16.mxu0 %v3115_v55  ;;  %v3124_v57 = vpop.eup %2432  ;;  %2446 = vpow2.f32 %v915_v51  ;;  %v1314_v51 = vrot.slane %v3156_v33, %v1313_v61 }
 0x350   :  { %2307 = vmatpush3.bf16.msra.mxu0 %v3115_v55 }
 0x351   :  { %973 = vadd.xlane.f32.xlu0 %v3119_v54 }
 0x353   :  { %967 = vadd.xlane.f32.xlu1 %v3124_v57 }
 0x354   :  { %v3127_v60 = vpop.eup %2434 }
 0x355   :  { %971 = vadd.xlane.f32.xlu0 %v3127_v60  ;;  %v3131_v3 = vpop.eup %2436 }
 0x356   :  { %v3134_v6 = vpop.eup %2438 }
 0x357   :  { %969 = vadd.xlane.f32.xlu1 %v3131_v3  ;;  %v3137_v5 = vpop.eup %2440 }
 0x35a   :  { %v3140_v7 = vpop.eup %2442 }
 0x35b   :  { %975 = vadd.xlane.f32.xlu1 %v3134_v6  ;;  %v3143_v59 = vpop.eup %2444 }
 0x35c   :  { %v3146_v8 = vpop.eup %2446 }
 0x35f   :  { %981 = vadd.xlane.f32.xlu1 %v3137_v5 }
 0x363   :  { %977 = vadd.xlane.f32.xlu1 %v3140_v7 }
 0x367   :  { %983 = vadd.xlane.f32.xlu1 %v3143_v59 }
 0x36b   :  { %1186 = vrot.lane.b32.xlu0 %v2668_v0, %s2521_s4  ;;  %979 = vadd.xlane.f32.xlu1 %v3146_v8  ;;  %v1798_v0 = vsel %vm1791_vm3, %v3162_v13, 0.0 }
 0x37c   :  { %1188 = vrot.lane.b32.xlu1 %v2726_v42, %s2521_s4  ;;  %v3168_v42 = vld [vmem:[%s3500_s1 + $0x18] sm:$0xff] }
 0x37d   :  { %v1801_v16 = vsel %vm1791_vm3, %v3168_v42, 0.0  ;;  %v1489_v62 = vrot.slane %v3168_v42, %v1320_v29  ;;  %v3193_v29 = vsub.s32 3, %v3176_v31 }
 0x38a   :  { %1793 = vadd.xlane.f32.xlu0 %v1792_v11  ;;  %v1384_v11 = vrot.slane %v3174_v14, %v1327_v52 }
 0x38e   :  { %1799 = vadd.xlane.f32.xlu0 %v1798_v0 }
 0x392   :  { %1802 = vadd.xlane.f32.xlu0 %v1801_v16 }
 0x3a0   :  { %1796 = vadd.xlane.f32.xlu1 %v1795_v35  ;;  %v1496_v35 = vrot.slane %v3168_v42, %v1327_v52 }
 0x3a6   :  { %v926_v30 = vpop.xlane.xlu0 %925 }
 0x3a8   :  { %1323 = vbcast.lane.b32.xlu0 %v1321_v17, 256 }
 0x3aa   :  { %v922_v26 = vpop.xlane.xlu0 %921 }
 0x3ac   :  { %1435 = vbcast.lane.b32.xlu0 %v1433_v58, 256  ;;  %v1426_v58 = vrot.slane %v3162_v13, %v1313_v61 }
 0x3ae   :  { %v928_v47 = vpop.xlane.xlu0 %927 }
 0x3af   :  { %2448 = vrcp.f32 %v928_v47 }
 0x3b0   :  { %v934_v46 = vpop.xlane.xlu1 %933  ;;  %1330 = vbcast.lane.b32.xlu0 %v1328_v20, 256  ;;  %2450 = vrcp.f32 %v922_v26  ;;  %v1335_v20 = vrot.slane %v3156_v33, %v3193_v29 }
 0x3b1   :  { %1379 = vbcast.lane.b32.xlu1 %v1377_v49, 256  ;;  %2452 = vrcp.f32 %v926_v30 }
 0x3b2   :  { %v924_v28 = vpop.xlane.xlu0 %923 }
 0x3b3   :  { %2454 = vrcp.f32 %v924_v28 }
 0x3b4   :  { %v930_v45 = vpop.xlane.xlu1 %929  ;;  %1442 = vbcast.lane.b32.xlu0 %v1440_v50, 256 }
 0x3b5   :  { %2456 = vrcp.f32 %v930_v45  ;;  %1491 = vbcast.lane.b32.xlu1 %v1489_v62, 256  ;;  %v3201_v45 = vsub.s32 4, %v3176_v31 }
 0x3b6   :  { %v932_v0 = vpop.xlane.xlu0 %931 }
 0x3b7   :  { %2458 = vrcp.f32 %v932_v0  ;;  %v1391_v0 = vrot.slane %v3174_v14, %v3193_v29 }
 0x3b8   :  { %v936_v16 = vpop.xlane.xlu1 %935  ;;  %1316 = vbcast.lane.b32.xlu0 %v1314_v51, 256 }
 0x3b9   :  { %2460 = vrcp.f32 %v936_v16  ;;  %1386 = vbcast.lane.b32.xlu1 %v1384_v11, 256 }
 0x3ba   :  { %2462 = vrcp.f32 %v934_v46  ;;  %v942_v17 = vpop.xlane.xlu0 %941  ;;  %v1482_v46 = vrot.slane %v3168_v42, %v1313_v61 }
 0x3bc   :  { %v938_v30 = vpop.xlane.xlu1 %937  ;;  %1372 = vbcast.lane.b32.xlu0 %v1370_v39, 256  ;;  %v2449_v26 = vpop.eup %2448 }
 0x3bd   :  { %2464 = vrcp.f32 %v938_v30  ;;  %1498 = vbcast.lane.b32.xlu1 %v1496_v35, 256  ;;  %v2451_v49 = vpop.eup %2450  ;;  %v1020_v28 = vmul.f32 %v2449_v26, %v3035_v63  ;;  %v1342_v26 = vrot.slane %v3156_v33, %v3201_v45 }
 0x3be   :  { %v940_v47 = vpop.xlane.xlu0 %939  ;;  %v2453_v50 = vpop.eup %2452  ;;  %v1017_v51 = vmul.f32 %v2451_v49, %v3029_v48 }
 0x3bf   :  { %2466 = vrcp.f32 %v940_v47  ;;  %v1019_v63 = vmul.f32 %v2453_v50, %v3025_v37 }
 0x3c0   :  { %v2455_v52 = vpop.eup %2454  ;;  %v944_v62 = vpop.xlane.xlu1 %943  ;;  %1428 = vbcast.lane.b32.xlu0 %v1426_v58, 256 }
 0x3c1   :  { %2468 = vrcp.f32 %v944_v62  ;;  %v1018_v11 = vmul.f32 %v2455_v52, %v3042_v9  ;;  %1337 = vbcast.lane.b32.xlu1 %v1335_v20, 256  ;;  %v1050_v58 = vpack.c.bf16 %v1020_v28, %v1019_v63 }
 0x3c2   :  { %v2457_v16 = vpop.eup %2456  ;;  %2470 = vrcp.f32 %v942_v17  ;;  %v950_v39 = vpop.xlane.xlu0 %949  ;;  %v1447_v17 = vrot.slane %v3162_v13, %v3193_v29 }
 0x3c3   :  { %v1049_v35 = vpack.c.bf16 %v1018_v11, %v1017_v51  ;;  %v1021_v48 = vmul.f32 %v2457_v16, %v3047_v12  ;;  %v1454_v12 = vrot.slane %v3162_v13, %v3201_v45 }
 0x3c4   :  { %v2459_v30 = vpop.eup %2458  ;;  %v946_v61 = vpop.xlane.xlu1 %945  ;;  %1484 = vbcast.lane.b32.xlu0 %v1482_v46, 256 }
 0x3c5   :  { %2472 = vrcp.f32 %v946_v61  ;;  %2280 = vmatprep.mubr.bf16.mxu1 %v1049_v35  ;;  %v1022_v9 = vmul.f32 %v2459_v30, %v3051_v23  ;;  %1393 = vbcast.lane.b32.xlu1 %v1391_v0, 256  ;;  %v3220_v23 = vsub.s32 5, %v3176_v31  ;;  %v1510_v61 = vrot.slane %v3168_v42, %v3201_v45 }
 0x3c6   :  { %v2461_v20 = vpop.eup %2460  ;;  %2281 = vmatmul.mubr.bf16.vlgmr.msra.gmra.mxu1 %v1050_v58  ;;  %v948_v37 = vpop.xlane.xlu0 %947 }
 0x3c7   :  { %v2463_v49 = vpop.eup %2462  ;;  %2336 = vmatpush3.bf16.msra.mxu1 %v2797_v18  ;;  %2474 = vrcp.f32 %v948_v37  ;;  %v1051_v47 = vpack.c.bf16 %v1022_v9, %v1021_v48  ;;  %v1024_v52 = vmul.f32 %v2461_v20, %v3055_v40  ;;  %v1503_v18 = vrot.slane %v3168_v42, %v3193_v29 }
 0x3c8   :  { %2329 = vmatprep.subr.bf16.mxu1 %v2815_v43  ;;  %v952_v50 = vpop.xlane.xlu1 %951  ;;  %1344 = vbcast.lane.b32.xlu0 %v1342_v26, 256  ;;  %v1023_v28 = vmul.f32 %v2463_v49, %v3039_v1  ;;  %v1349_v11 = vrot.slane %v3156_v33, %v3220_v23  ;;  %v1398_v1 = vrot.slane %v3174_v14, %v3201_v45 }
 0x3c9   :  { %2476 = vrcp.f32 %v952_v50  ;;  %2284 = vmatprep.mubr.bf16.mxu1 %v1051_v47  ;;  %1449 = vbcast.lane.b32.xlu1 %v1447_v17, 256  ;;  %v1405_v45 = vrot.slane %v3174_v14, %v3220_v23  ;;  %v1517_v50 = vrot.slane %v3168_v42, %v3220_v23 }
 0x3ca   :  { %v2465_v62 = vpop.eup %2464  ;;  %2478 = vrcp.f32 %v950_v39  ;;  %v1052_v51 = vpack.c.bf16 %v1024_v52, %v1023_v28 }
 0x3cb   :  { %2337 = vmatpush3.bf16.msra.mxu1 %v2815_v43  ;;  %v1025_v0 = vmul.f32 %v2465_v62, %v3062_v53  ;;  %v1461_v53 = vrot.slane %v3162_v13, %v3220_v23 }
 0x3cc   :  { %v2467_v40 = vpop.eup %2466  ;;  %2330 = vmatprep.subr.bf16.mxu1 %v2791_v15  ;;  %v3227_v46 = vpop.xlane.xlu1 %957  ;;  %1456 = vbcast.lane.b32.xlu0 %v1454_v12, 256 }
 0x3cd   :  { %v1026_v29 = vmul.f32 %v2467_v40, %v3066_v22  ;;  %1505 = vbcast.lane.b32.xlu1 %v1503_v18, 256  ;;  %v1355_v22 = vsub.s32 6, %v3176_v31 }
 0x3ce   :  { %v2469_v16 = vpop.eup %2468  ;;  %2285 = vmatmul.mubr.bf16.gmra.mxu1 %v1052_v51  ;;  %v956_v43 = vpop.xlane.xlu0 %955 }
 0x3cf   :  { %v2471_v39 = vpop.eup %2470  ;;  %2338 = vmatpush3.bf16.msra.mxu1 %v2791_v15  ;;  %2480 = vrcp.f32 %v956_v43  ;;  %v1053_v63 = vpack.c.bf16 %v1026_v29, %v1025_v0  ;;  %v1028_v30 = vmul.f32 %v2469_v16, %v3071_v36  ;;  %v1356_v9 = vrot.slane %v3156_v33, %v1355_v22 }
 0x3d0   :  { %2331 = vmatprep.subr.bf16.mxu1 %v2801_v19  ;;  %v954_v35 = vpop.xlane.xlu1 %953  ;;  %1351 = vbcast.lane.b32.xlu0 %v1349_v11, 256  ;;  %v1027_v58 = vmul.f32 %v2471_v39, %v3058_v21  ;;  %v1412_v62 = vrot.slane %v3174_v14, %v1355_v22  ;;  %v1524_v11 = vrot.slane %v3168_v42, %v1355_v22 }
 0x3d1   :  { %2482 = vrcp.f32 %v954_v35  ;;  %2288 = vmatprep.mubr.bf16.mxu1 %v1053_v63  ;;  %1400 = vbcast.lane.b32.xlu1 %v1398_v1, 256 }
 0x3d2   :  { %v2473_v15 = vpop.eup %2472  ;;  %v1054_v48 = vpack.c.bf16 %v1028_v30, %v1027_v58 }
 0x3d3   :  { %2339 = vmatpush3.bf16.msra.mxu1 %v2801_v19  ;;  %v1029_v17 = vmul.f32 %v2473_v15, %v3078_v2  ;;  %v1468_v2 = vrot.slane %v3162_v13, %v1355_v22 }
 0x3d4   :  { %v2475_v26 = vpop.eup %2474  ;;  %2332 = vmatprep.subr.bf16.mxu1 %v2805_v25  ;;  %v960_v36 = vpop.xlane.xlu1 %959  ;;  %1463 = vbcast.lane.b32.xlu0 %v1461_v53, 256 }
 0x3d5   :  { %v1030_v20 = vmul.f32 %v2475_v26, %v3082_v4  ;;  %1512 = vbcast.lane.b32.xlu1 %v1510_v61, 256  ;;  %v1362_v4 = vsub.s32 7, %v3176_v31  ;;  %2484 = vrcp.f32 %v960_v36 }
 0x3d6   :  { %v2477_v37 = vpop.eup %2476  ;;  %2289 = vmatmul.mubr.bf16.gmra.mxu1 %v1054_v48 }
 0x3d7   :  { %v2479_v21 = vpop.eup %2478  ;;  %2340 = vmatpush3.bf16.msra.mxu1 %v2805_v25  ;;  %v1055_v19 = vpack.c.bf16 %v1030_v20, %v1029_v17  ;;  %v1032_v47 = vmul.f32 %v2477_v37, %v3087_v10  ;;  %v1363_v10 = vrot.slane %v3156_v33, %v1362_v4  ;;  %v1419_v0 = vrot.slane %v3174_v14, %v1362_v4 }
 0x3d8   :  { %2333 = vmatprep.subr.bf16.mxu1 %v3115_v55  ;;  %v962_v49 = vpop.xlane.xlu1 %961  ;;  %1358 = vbcast.lane.b32.xlu0 %v1356_v9, 256  ;;  %v1031_v52 = vmul.f32 %v2479_v21, %v3074_v38  ;;  %v1475_v38 = vrot.slane %v3162_v13, %v1362_v4 }
 0x3d9   :  { %2292 = vmatprep.mubr.bf16.mxu1 %v1055_v19  ;;  %1407 = vbcast.lane.b32.xlu1 %v1405_v45, 256  ;;  %2486 = vrcp.f32 %v962_v49 }
 0x3da   :  { %v1056_v18 = vpack.c.bf16 %v1032_v47, %v1031_v52  ;;  %2488 = vrcp.f32 %v3227_v46 }
 0x3db   :  { %2341 = vmatpush3.bf16.msra.mxu1 %v3115_v55  ;;  %v966_v55 = vpop.xlane.xlu0 %965 }
 0x3dc   :  { %v2481_v25 = vpop.eup %2480  ;;  %v968_v12 = vpop.xlane.xlu1 %967  ;;  %1470 = vbcast.lane.b32.xlu0 %v1468_v2, 256 }
 0x3dd   :  { %1519 = vbcast.lane.b32.xlu1 %v1517_v50, 256  ;;  %v1034_v40 = vmul.f32 %v2481_v25, %v3095_v24  ;;  %v1531_v24 = vrot.slane %v3168_v42, %v1362_v4 }
 0x3de   :  { %v2483_v28 = vpop.eup %2482  ;;  %2293 = vmatmul.mubr.bf16.gmra.mxu1 %v1056_v18 }
 0x3df   :  { %v1033_v31 = vmul.f32 %v2483_v28, %v3099_v32  ;;  %v964_v29 = vpop.xlane.xlu0 %963 }
 0x3e0   :  { %v970_v23 = vpop.xlane.xlu1 %969  ;;  %1365 = vbcast.lane.b32.xlu0 %v1363_v10, 256  ;;  %2490 = vrcp.f32 %v964_v29 }
 0x3e1   :  { %v1057_v51 = vpack.c.bf16 %v1034_v40, %v1033_v31  ;;  %1414 = vbcast.lane.b32.xlu1 %v1412_v62, 256  ;;  %2492 = vrcp.f32 %v966_v55 }
 0x3e2   :  { %2494 = vrcp.f32 %v968_v12  ;;  %v2485_v42 = vpop.eup %2484 }
 0x3e3   :  { %2312 = vmatprep.mubr.bf16.mxu0 %v1057_v51  ;;  %v974_v13 = vpop.xlane.xlu0 %973  ;;  %2496 = vrcp.f32 %v970_v23  ;;  %v1036_v53 = vmul.f32 %v2485_v42, %v3104_v44 }
 0x3e4   :  { %v976_v33 = vpop.xlane.xlu1 %975  ;;  %1477 = vbcast.lane.b32.xlu0 %v1475_v38, 256 }
 0x3e5   :  { %1526 = vbcast.lane.b32.xlu1 %v1524_v11, 256 }
 0x3e6   :  { %v2487_v63 = vpop.eup %2486 }
 0x3e7   :  { %v972_v43 = vpop.xlane.xlu0 %971  ;;  %v2489_v46 = vpop.eup %2488  ;;  %v1037_v61 = vmul.f32 %v2487_v63, %v3113_v56 }
 0x3e8   :  { %v982_v1 = vpop.xlane.xlu1 %981  ;;  %v1035_v58 = vmul.f32 %v2489_v46, %v3091_v27 }
 0x3e9   :  { %1421 = vbcast.lane.b32.xlu1 %v1419_v0, 256 }
 0x3ea   :  { %v1058_v9 = vpack.c.bf16 %v1036_v53, %v1035_v58 }
 0x3eb   :  { %v1187_v35 = vpop.permute.xlu0 %1186 }
 0x3ec   :  { %v978_v32 = vpop.xlane.xlu1 %977 }
 0x3ed   :  { %1533 = vbcast.lane.b32.xlu1 %v1531_v24, 256  ;;  %v2491_v30 = vpop.eup %2490 }
 0x3ee   :  { %v2493_v22 = vpop.eup %2492  ;;  %v1038_v36 = vmul.f32 %v2491_v30, %v3109_v41 }
 0x3ef   :  { %v2495_v15 = vpop.eup %2494  ;;  %v1039_v2 = vmul.f32 %v2493_v22, %v3102_v34 }
 0x3f0   :  { %v984_v16 = vpop.xlane.xlu1 %983  ;;  %v2497_v26 = vpop.eup %2496  ;;  %v1059_v20 = vpack.c.bf16 %v1038_v36, %v1037_v61  ;;  %v1040_v19 = vmul.f32 %v2495_v15, %v3124_v57 }
 0x3f1   :  { %2498 = vrcp.f32 %v984_v16  ;;  %v1041_v41 = vmul.f32 %v2497_v26, %v3131_v3 }
 0x3f2   :  { %2500 = vrcp.f32 %v978_v32  ;;  %v1060_v52 = vpack.c.bf16 %v1040_v19, %v1039_v2 }
 0x3f3   :  { %2502 = vrcp.f32 %v982_v1 }
 0x3f4   :  { %v980_v14 = vpop.xlane.xlu1 %979 }
 0x3f5   :  { %2504 = vrcp.f32 %v980_v14 }
 0x3f6   :  { %2506 = vrcp.f32 %v972_v43 }
 0x3f7   :  { %2508 = vrcp.f32 %v976_v33 }
 0x3f8   :  { %v1189_v39 = vpop.permute.xlu1 %1188  ;;  %2510 = vrcp.f32 %v974_v13 }
 0x3f9   :  { %2308 = vmatprep.subr.bf16.mxu0 %v1189_v39  ;;  %2334 = vmatprep.subr.bf16.mxu1 %v1189_v39 }
 0x3fa   :  { %2309 = vmatpush3.bf16.msra.mxu0 %v1189_v39  ;;  %2342 = vmatpush3.bf16.msra.mxu1 %v1189_v39 }
 0x3fb   :  { %2310 = vmatprep.subr.bf16.mxu0 %v1187_v35  ;;  %2335 = vmatprep.subr.bf16.mxu1 %v1187_v35 }
 0x3fe   :  { %2311 = vmatpush3.bf16.msra.mxu0 %v1187_v35  ;;  %2343 = vmatpush3.bf16.msra.mxu1 %v1187_v35  ;;  %v2499_v48 = vpop.eup %2498 }
 0x3ff   :  { %v2501_v17 = vpop.eup %2500  ;;  %v1048_v44 = vmul.f32 %v2499_v48, %v3143_v59 }
 0x400   :  { %v2503_v45 = vpop.eup %2502  ;;  %v1045_v21 = vmul.f32 %v2501_v17, %v3140_v7 }
 0x401   :  { %2313 = vmatmul.mubr.bf16.vlgmr.msra.gmra.mxu0 %v1058_v9  ;;  %v1047_v49 = vmul.f32 %v2503_v45, %v3137_v5 }
 0x402   :  { %v2505_v37 = vpop.eup %2504  ;;  %2316 = vmatprep.mubr.bf16.mxu0 %v1059_v20 }
 0x403   :  { %v2507_v56 = vpop.eup %2506  ;;  %v1046_v27 = vmul.f32 %v2505_v37, %v3146_v8  ;;  %v1064_v4 = vpack.c.bf16 %v1048_v44, %v1047_v49 }
 0x404   :  { %v1042_v50 = vmul.f32 %v2507_v56, %v3127_v60  ;;  %v2509_v59 = vpop.eup %2508 }
 0x405   :  { %v1063_v47 = vpack.c.bf16 %v1046_v27, %v1045_v21  ;;  %v2511_v7 = vpop.eup %2510  ;;  %v1044_v57 = vmul.f32 %v2509_v59, %v3134_v6 }
 0x406   :  { %v1061_v25 = vpack.c.bf16 %v1042_v50, %v1041_v41  ;;  %v1043_v5 = vmul.f32 %v2511_v7, %v3119_v54 }
 0x407   :  { %2324 = vmatprep.mubr.bf16.mxu1 %v1063_v47 }
 0x408   :  { %2325 = vmatmul.mubr.bf16.vlgmr.msra.gmra.mxu1 %v1064_v4  ;;  %v1062_v8 = vpack.c.bf16 %v1044_v57, %v1043_v5 }
 0x409   :  { %2317 = vmatmul.mubr.bf16.gmra.mxu0 %v1060_v52 }
 0x40a   :  { %2320 = vmatprep.mubr.bf16.mxu0 %v1061_v25 }
 0x411   :  { %2321 = vmatmul.mubr.bf16.gmra.mxu0 %v1062_v8 }
 0x413   :  { %v1794_v3 = vpop.xlane.xlu0 %1793 }
 0x414   :  { %v1804_v32 = vmax.f32 %v1794_v3, 1.0 }
 0x416   :  { %2512 = vrcp.f32 %v1804_v32 }
 0x417   :  { %v3283_v12 = vpop.xlane.xlu0 %1799 }
 0x41b   :  { %v3285_v34 = vpop.xlane.xlu0 %1802 }
 0x41f   :  { %v1324_v60 = vpop.permute.xlu0 %1323 }
 0x423   :  { %v3287_v18 = vpop.permute.xlu0 %1435  ;;  %v3326_v15 = vpop.eup %2512 }
 0x424   :  { %v1821_v44 = vrot.slane %v3326_v15, 2  ;;  %v1822_v19 = vrot.slane %v3326_v15, 3  ;;  %v1820_v41 = vrot.slane %v3326_v15, 1  ;;  %v1825_v57 = vrot.slane %v3326_v15, 6 }
 0x425   :  { %v1823_v8 = vrot.slane %v3326_v15, 4 }
 0x427   :  { %v1331_v10 = vpop.permute.xlu0 %1330 }
 0x429   :  { %v3289_v62 = vpop.xlane.xlu1 %1796 }
 0x42b   :  { %v3291_v28 = vpop.permute.xlu0 %1442 }
 0x42d   :  { %v3293_v31 = vpop.permute.xlu1 %1379 }
 0x42f   :  { %v1317_v6 = vpop.permute.xlu0 %1316 }
 0x431   :  { %v3295_v40 = vpop.permute.xlu1 %1491 }
 0x433   :  { %v3297_v54 = vpop.permute.xlu0 %1372 }
 0x435   :  { %v3299_v23 = vpop.permute.xlu1 %1386 }
 0x437   :  { %v3301_v38 = vpop.permute.xlu0 %1428 }
 0x439   :  { %v3303_v55 = vpop.permute.xlu1 %1498 }
 0x43b   :  { %v3305_v51 = vpop.permute.xlu0 %1484 }
 0x43d   :  { %v1338_v11 = vpop.permute.xlu1 %1337 }
 0x43f   :  { %v1345_v33 = vpop.permute.xlu0 %1344 }
 0x441   :  { %v3307_v0 = vpop.permute.xlu1 %1393 }
 0x443   :  { %v3309_v29 = vpop.permute.xlu0 %1456 }
 0x445   :  { %v3311_v1 = vpop.permute.xlu1 %1449 }
 0x447   :  { %v3313_v24 = vpop.permute.xlu0 %1351 }
 0x449   :  { %v3315_v13 = vpop.permute.xlu1 %1505 }
 0x44b   :  { %v3317_v16 = vpop.permute.xlu0 %1463 }
 0x44d   :  { %v3319_v43 = vpop.permute.xlu1 %1400 }
 0x44f   :  { %v1359_v14 = vpop.permute.xlu0 %1358 }
 0x451   :  { %v3321_v39 = vpop.permute.xlu1 %1512 }
 0x453   :  { %v3324_v61 = vpop.permute.xlu0 %1470 }
 0x455   :  { %v3329_v17 = vpop.permute.xlu1 %1407 }
 0x457   :  { %v1366_v25 = vpop.permute.xlu0 %1365 }
 0x459   :  { %v3339_v32 = vpop.permute.xlu1 %1519 }
 0x486   :  { %v2282_v42 = vpop.f32.mrf.mxu1 }
 0x487   :  { %v1537_v63 = vmul.f32 %v2282_v42, %v1331_v10 }
 0x488   :  { %v1123_v46 = vpop.f32.mrf.mxu1 }
 0x489   :  { %v1581_v35 = vsel %vm446_vm2, %v1537_v63, 0.0  ;;  %v1535_v30 = vmul.f32 %v1317_v6, %v1123_v46 }
 0x48a   :  { %v1582_v53 = vrot.slane %v1581_v35, 4  ;;  %v2283_v22 = vpop.f32.mrf.mxu1 }
 0x48b   :  { %v1567_v58 = vsel %vm446_vm2, %v1535_v30, 0.0  ;;  %v1538_v26 = vmul.f32 %v2283_v22, %v1338_v11 }
 0x48c   :  { %v1583_v36 = vadd.f32 %v1582_v53, %v1581_v35  ;;  %v1568_v48 = vrot.slane %v1567_v58, 4  ;;  %v1126_v9 = vpop.f32.mrf.mxu1 }
 0x48d   :  { %v1588_v20 = vsel %vm446_vm2, %v1538_v26, 0.0  ;;  %v1536_v45 = vmul.f32 %v1324_v60, %v1126_v9 }
 0x48e   :  { %v1584_v37 = vrot.slane %v1583_v36, 2  ;;  %v1569_v56 = vadd.f32 %v1568_v48, %v1567_v58  ;;  %v1589_v21 = vrot.slane %v1588_v20, 4  ;;  %v2286_v27 = vpop.f32.mrf.mxu1 }
 0x48f   :  { %v1574_v49 = vsel %vm446_vm2, %v1536_v45, 0.0  ;;  %v1541_v47 = vmul.f32 %v2286_v27, %v1359_v14  ;;  %v1805_v14 = vmax.f32 %v3289_v62, 1.0  ;;  %v1826_v62 = vrot.slane %v3326_v15, 7 }
 0x490   :  { %v1585_v2 = vadd.f32 %v1584_v37, %v1583_v36  ;;  %v1570_v4 = vrot.slane %v1569_v56, 2  ;;  %v1590_v50 = vadd.f32 %v1589_v21, %v1588_v20  ;;  %v1575_v52 = vrot.slane %v1574_v49, 4  ;;  %v1139_v59 = vpop.f32.mrf.mxu1 }
 0x491   :  { %v1609_v7 = vsel %vm446_vm2, %v1541_v47, 0.0  ;;  %v1539_v5 = vmul.f32 %v1345_v33, %v1139_v59  ;;  %2514 = vrcp.f32 %v1805_v14 }
 0x492   :  { %v1586_v3 = vrot.slane %v1585_v2, 1  ;;  %v1571_v60 = vadd.f32 %v1570_v4, %v1569_v56  ;;  %v1591_v10 = vrot.slane %v1590_v50, 2  ;;  %v1576_v6 = vadd.f32 %v1575_v52, %v1574_v49  ;;  %v2287_v11 = vpop.f32.mrf.mxu1  ;;  %v1415_v52 = vpop.permute.xlu1 %1414 }
 0x493   :  { %v1610_v42 = vrot.slane %v1609_v7, 4  ;;  %v1595_v63 = vsel %vm446_vm2, %v1539_v5, 0.0  ;;  %v1542_v46 = vmul.f32 %v2287_v11, %v1366_v25 }
 0x494   :  { %v1587_v35 = vadd.f32 %v1586_v3, %v1585_v2  ;;  %v1572_v30 = vrot.slane %v1571_v60, 1  ;;  %v1592_v53 = vadd.f32 %v1591_v10, %v1590_v50  ;;  %v1577_v22 = vrot.slane %v1576_v6, 2  ;;  %v1142_v33 = vpop.f32.mrf.mxu1 }
 0x495   :  { %v1611_v58 = vadd.f32 %v1610_v42, %v1609_v7  ;;  %v1596_v26 = vrot.slane %v1595_v63, 4  ;;  %v1616_v36 = vsel %vm446_vm2, %v1542_v46, 0.0  ;;  %v1540_v48 = vmul.f32 %v3313_v24, %v1142_v33 }
 0x496   :  { %v1882_v9 = vmul.f32 %v1821_v44, %v1587_v35  ;;  %v1593_v20 = vrot.slane %v1592_v53, 1  ;;  %v1578_v45 = vadd.f32 %v1577_v22, %v1576_v6  ;;  %v2290_v37 = vpop.f32.mrf.mxu1  ;;  %v1617_v27 = vrot.slane %v1616_v36, 4 }
 0x497   :  { %v1612_v56 = vrot.slane %v1611_v58, 2  ;;  %v1597_v21 = vadd.f32 %v1596_v26, %v1595_v63  ;;  %v1602_v49 = vsel %vm446_vm2, %v1540_v48, 0.0  ;;  %v1573_v47 = vadd.f32 %v1572_v30, %v1571_v60 }
 0x498   :  { %v1594_v2 = vadd.f32 %v1593_v20, %v1592_v53  ;;  %v1579_v4 = vrot.slane %v1578_v45, 1  ;;  %v1155_v50 = vpop.f32.mrf.mxu1  ;;  %v1618_v44 = vadd.f32 %v1617_v27, %v1616_v36  ;;  %v1603_v25 = vrot.slane %v1602_v49, 4 }
 0x499   :  { %v1613_v59 = vadd.f32 %v1612_v56, %v1611_v58  ;;  %v1598_v24 = vrot.slane %v1597_v21, 2  ;;  %v1947_v7 = vrot.slane %v1882_v9, 6  ;;  %v1545_v3 = vmul.f32 %v2290_v37, %v3299_v23  ;;  %v3357_v9 = vpop.permute.xlu1 %1526 }
 0x49a   :  { %v1580_v5 = vadd.f32 %v1579_v4, %v1578_v45  ;;  %v1543_v10 = vmul.f32 %v3297_v54, %v1155_v50  ;;  %v2291_v6 = vpop.f32.mrf.mxu1  ;;  %v1619_v14 = vrot.slane %v1618_v44, 2  ;;  %v1604_v60 = vadd.f32 %v1603_v25, %v1602_v49 }
 0x49b   :  { %v1614_v11 = vrot.slane %v1613_v59, 1  ;;  %v1599_v42 = vadd.f32 %v1598_v24, %v1597_v21  ;;  %v1880_v63 = vmul.f32 %v3326_v15, %v1573_v47  ;;  %v1637_v35 = vsel %vm446_vm2, %v1545_v3, 0.0 }
 0x49c   :  { %v1881_v46 = vmul.f32 %v1820_v41, %v1580_v5  ;;  %v1623_v30 = vsel %vm446_vm2, %v1543_v10, 0.0  ;;  %v1158_v53 = vpop.f32.mrf.mxu1  ;;  %v1883_v23 = vmul.f32 %v1822_v19, %v1594_v2  ;;  %v1620_v54 = vadd.f32 %v1619_v14, %v1618_v44 }
 0x49d   :  { %v1600_v22 = vrot.slane %v1599_v42, 1  ;;  %v1605_v33 = vrot.slane %v1604_v60, 2  ;;  %v1638_v26 = vrot.slane %v1637_v35, 4  ;;  %v1624_v36 = vrot.slane %v1623_v30, 4 }
 0x49e   :  { %v1944_v58 = vrot.slane %v1881_v46, 7  ;;  %v1546_v48 = vmul.f32 %v2291_v6, %v3307_v0  ;;  %v2294_v41 = vpop.f32.mrf.mxu1  ;;  %v1615_v20 = vadd.f32 %v1614_v11, %v1613_v59  ;;  %v1621_v37 = vrot.slane %v1620_v54, 1  ;;  %v1422_v11 = vpop.permute.xlu1 %1421 }
 0x49f   :  { %v1601_v45 = vadd.f32 %v1600_v22, %v1599_v42  ;;  %v1606_v56 = vadd.f32 %v1605_v33, %v1604_v60  ;;  %v1639_v27 = vadd.f32 %v1638_v26, %v1637_v35  ;;  %v1625_v19 = vadd.f32 %v1624_v36, %v1623_v30  ;;  %v3368_v14 = vpop.eup %2514 }
 0x4a0   :  { %v1946_v21 = vsel %vm1945_vm4, %v1944_v58, %v1880_v63  ;;  %v1644_v49 = vsel %vm446_vm2, %v1546_v48, 0.0  ;;  %v1171_v47 = vpop.f32.mrf.mxu1  ;;  %v1824_v4 = vrot.slane %v3326_v15, 5  ;;  %v1622_v50 = vadd.f32 %v1621_v37, %v1620_v54 }
 0x4a1   :  { %v1884_v2 = vmul.f32 %v1823_v8, %v1601_v45  ;;  %v1949_v0 = vsel %vm1948_vm5, %v1947_v7, %v1946_v21  ;;  %v1607_v59 = vrot.slane %v1606_v56, 1  ;;  %v1640_v24 = vrot.slane %v1639_v27, 2 }
 0x4a2   :  { %v1950_v44 = vrot.slane %v1883_v23, 5  ;;  %v1645_v25 = vrot.slane %v1644_v49, 4  ;;  %v1544_v5 = vmul.f32 %v3293_v31, %v1158_v53  ;;  %v1886_v3 = vmul.f32 %v1825_v57, %v1615_v20  ;;  %v2295_v42 = vpop.f32.mrf.mxu1 }
 0x4a3   :  { %v1608_v10 = vadd.f32 %v1607_v59, %v1606_v56  ;;  %v1626_v6 = vrot.slane %v1625_v19, 2  ;;  %v1549_v8 = vmul.f32 %v2294_v41, %v1415_v52  ;;  %v1953_v60 = vrot.slane %v1884_v2, 4 }
 0x4a4   :  { %v1952_v7 = vsel %vm1951_vm6, %v1950_v44, %v1949_v0  ;;  %v1646_v63 = vadd.f32 %v1645_v25, %v1644_v49  ;;  %v1630_v46 = vsel %vm446_vm2, %v1544_v5, 0.0  ;;  %v1887_v35 = vmul.f32 %v1826_v62, %v1622_v50  ;;  %v1174_v56 = vpop.f32.mrf.mxu1 }
 0x4a5   :  { %v1885_v31 = vmul.f32 %v1824_v4, %v1608_v10  ;;  %v1641_v30 = vadd.f32 %v1640_v24, %v1639_v27  ;;  %v1631_v53 = vrot.slane %v1630_v46, 4  ;;  %v1665_v23 = vsel %vm446_vm2, %v1549_v8, 0.0 }
 0x4a6   :  { %v1647_v57 = vrot.slane %v1646_v63, 2  ;;  %v1547_v52 = vmul.f32 %v3319_v43, %v1171_v47  ;;  %v1550_v22 = vmul.f32 %v2295_v42, %v1422_v11  ;;  %v1959_v54 = vrot.slane %v1886_v3, 2 }
 0x4a7   :  { %v1956_v33 = vrot.slane %v1885_v31, 3  ;;  %v1627_v58 = vadd.f32 %v1626_v6, %v1625_v19  ;;  %v1632_v26 = vadd.f32 %v1631_v53, %v1630_v46  ;;  %v1955_v36 = vsel %vm1954_vm7, %v1953_v60, %v1952_v7 }
 0x4a8   :  { %v1666_v48 = vrot.slane %v1665_v23, 4  ;;  %v1651_v41 = vsel %vm446_vm2, %v1547_v52, 0.0  ;;  %v1672_v15 = vsel %vm446_vm2, %v1550_v22, 0.0  ;;  %v1962_v62 = vrot.slane %v1887_v35, 1 }
 0x4a9   :  { %v1958_v20 = vsel %vm1957_vm8, %v1956_v33, %v1955_v36  ;;  %v1648_v45 = vadd.f32 %v1647_v57, %v1646_v63  ;;  %v1633_v37 = vrot.slane %v1632_v26, 2  ;;  %v1642_v21 = vrot.slane %v1641_v30, 1 }
 0x4aa   :  { %v1961_v43 = vsel %vm1960_vm9, %v1959_v54, %v1958_v20  ;;  %v1667_v27 = vadd.f32 %v1666_v48, %v1665_v23  ;;  %v1652_v49 = vrot.slane %v1651_v41, 4  ;;  %v1628_v47 = vrot.slane %v1627_v58, 1 }
 0x4ab   :  { %v1964_v19 = vsel %vm1963_vm10, %v1962_v62, %v1961_v43  ;;  %v1634_v2 = vadd.f32 %v1633_v37, %v1632_v26  ;;  %v1673_v4 = vrot.slane %v1672_v15, 4  ;;  %v1828_v0 = vrot.slane %v3368_v14, 2 }
 0x4ac   :  { %2011 = vst.msk [vmem:[%s3501_s5] sm:$0xff] %vm446_vm2, %v1964_v19  ;;  %v1668_v50 = vrot.slane %v1667_v27, 2  ;;  %v1653_v59 = vadd.f32 %v1652_v49, %v1651_v41  ;;  %v1548_v24 = vmul.f32 %v3329_v17, %v1174_v56  ;;  %v1649_v44 = vrot.slane %v1648_v45, 1 }
 0x4ad   :  { %v1635_v25 = vrot.slane %v1634_v2, 1  ;;  %v1827_v5 = vrot.slane %v3368_v14, 1  ;;  %v1674_v3 = vadd.f32 %v1673_v4, %v1672_v15  ;;  %v1643_v10 = vadd.f32 %v1642_v21, %v1641_v30 }
 0x4ae   :  { %v1669_v6 = vadd.f32 %v1668_v50, %v1667_v27  ;;  %v1654_v8 = vrot.slane %v1653_v59, 2  ;;  %v1658_v11 = vsel %vm446_vm2, %v1548_v24, 0.0  ;;  %v1629_v42 = vadd.f32 %v1628_v47, %v1627_v58 }
 0x4af   :  { %v1636_v7 = vadd.f32 %v1635_v25, %v1634_v2  ;;  %v1675_v60 = vrot.slane %v1674_v3, 2  ;;  %v1659_v63 = vrot.slane %v1658_v11, 4  ;;  %v1829_v46 = vrot.slane %v3368_v14, 3 }
 0x4b0   :  { %v1655_v35 = vadd.f32 %v1654_v8, %v1653_v59  ;;  %v1650_v31 = vadd.f32 %v1649_v44, %v1648_v45  ;;  %v1890_v23 = vmul.f32 %v1828_v0, %v1643_v10  ;;  %v1670_v52 = vrot.slane %v1669_v6, 1 }
 0x4b1   :  { %v1889_v53 = vmul.f32 %v1827_v5, %v1636_v7  ;;  %v1676_v17 = vadd.f32 %v1675_v60, %v1674_v3  ;;  %v1660_v57 = vadd.f32 %v1659_v63, %v1658_v11  ;;  %v1830_v30 = vrot.slane %v3368_v14, 4 }
 0x4b2   :  { %v1656_v22 = vrot.slane %v1655_v35, 1  ;;  %v1888_v54 = vmul.f32 %v3368_v14, %v1629_v42  ;;  %v1891_v48 = vmul.f32 %v1829_v46, %v1650_v31  ;;  %v1967_v62 = vrot.slane %v1890_v23, 6 }
 0x4b3   :  { %v1965_v33 = vrot.slane %v1889_v53, 7  ;;  %v1677_v26 = vrot.slane %v1676_v17, 1  ;;  %v1661_v58 = vrot.slane %v1660_v57, 2  ;;  %v1671_v20 = vadd.f32 %v1670_v52, %v1669_v6 }
 0x4b4   :  { %v1657_v36 = vadd.f32 %v1656_v22, %v1655_v35  ;;  %v1832_v45 = vrot.slane %v3368_v14, 6  ;;  %v1969_v27 = vrot.slane %v1891_v48, 5  ;;  %v1833_v49 = vrot.slane %v3368_v14, 7 }
 0x4b5   :  { %v1966_v41 = vsel %vm1945_vm4, %v1965_v33, %v1888_v54  ;;  %v1662_v15 = vadd.f32 %v1661_v58, %v1660_v57  ;;  %v1678_v56 = vadd.f32 %v1677_v26, %v1676_v17  ;;  %v1831_v47 = vrot.slane %v3368_v14, 5 }
 0x4b6   :  { %v1892_v37 = vmul.f32 %v1830_v30, %v1657_v36  ;;  %v1968_v21 = vsel %vm1948_vm5, %v1967_v62, %v1966_v41  ;;  %v1894_v2 = vmul.f32 %v1832_v45, %v1671_v20  ;;  %v1806_v8 = vmax.f32 %v3283_v12, 1.0 }
 0x4b7   :  { %v1663_v43 = vrot.slane %v1662_v15, 1  ;;  %v1970_v0 = vsel %vm1951_vm6, %v1969_v27, %v1968_v21  ;;  %v1895_v50 = vmul.f32 %v1833_v49, %v1678_v56  ;;  %v1807_v31 = vmax.f32 %v3285_v34, 1.0 }
 0x4b8   :  { %v1971_v4 = vrot.slane %v1892_v37, 4  ;;  %v1975_v44 = vrot.slane %v1894_v2, 2  ;;  %2516 = vrcp.f32 %v1806_v8 }
 0x4b9   :  { %v1664_v19 = vadd.f32 %v1663_v43, %v1662_v15  ;;  %v1977_v5 = vrot.slane %v1895_v50, 1  ;;  %2518 = vrcp.f32 %v1807_v31 }
 0x4ba   :  { %v1972_v25 = vsel %vm1954_vm7, %v1971_v4, %v1970_v0  ;;  %v1478_v0 = vpop.permute.xlu0 %1477 }
 0x4bb   :  { %v1893_v59 = vmul.f32 %v1831_v47, %v1664_v19 }
 0x4bd   :  { %v1973_v24 = vrot.slane %v1893_v59, 3 }
 0x4bf   :  { %v1974_v3 = vsel %vm1957_vm8, %v1973_v24, %v1972_v25 }
 0x4c0   :  { %v1976_v10 = vsel %vm1960_vm9, %v1975_v44, %v1974_v3 }
 0x4c1   :  { %v2314_v6 = vpop.f32.mrf.mxu0  ;;  %v1978_v14 = vsel %vm1963_vm10, %v1977_v5, %v1976_v10 }
 0x4c2   :  { %v1553_v11 = vmul.f32 %v2314_v6, %v3291_v28  ;;  %2012 = vst.msk [vmem:[%s3501_s5 + $0x8] sm:$0xff] %vm446_vm2, %v1978_v14 }
 0x4c3   :  { %v1244_v42 = vpop.f32.mrf.mxu0 }
 0x4c4   :  { %v1693_v7 = vsel %vm446_vm2, %v1553_v11, 0.0  ;;  %v1551_v60 = vmul.f32 %v3301_v38, %v1244_v42  ;;  %v1534_v42 = vpop.permute.xlu1 %1533 }
 0x4c5   :  { %v1694_v63 = vrot.slane %v1693_v7, 4  ;;  %v2315_v46 = vpop.f32.mrf.mxu0  ;;  %v3424_v50 = vpop.eup %2516 }
 0x4c6   :  { %v1679_v35 = vsel %vm446_vm2, %v1551_v60, 0.0  ;;  %v1554_v12 = vmul.f32 %v2315_v46, %v3311_v1  ;;  %v1835_v6 = vrot.slane %v3424_v50, 2  ;;  %v1836_v8 = vrot.slane %v3424_v50, 3 }
 0x4c7   :  { %v1695_v28 = vadd.f32 %v1694_v63, %v1693_v7  ;;  %v1680_v53 = vrot.slane %v1679_v35, 4  ;;  %v1247_v17 = vpop.f32.mrf.mxu0  ;;  %v1834_v60 = vrot.slane %v3424_v50, 1 }
 0x4c8   :  { %v1700_v57 = vsel %vm446_vm2, %v1554_v12, 0.0  ;;  %v1552_v23 = vmul.f32 %v3287_v18, %v1247_v17  ;;  %v2326_v52 = vpop.f32.mrf.mxu1  ;;  %v3431_v12 = vpop.eup %2518  ;;  %v1839_v17 = vrot.slane %v3424_v50, 6 }
 0x4c9   :  { %v1696_v22 = vrot.slane %v1695_v28, 2  ;;  %v1681_v30 = vadd.f32 %v1680_v53, %v1679_v35  ;;  %v1701_v38 = vrot.slane %v1700_v57, 4  ;;  %v2318_v54 = vpop.f32.mrf.mxu0  ;;  %v1565_v1 = vmul.f32 %v2326_v52, %v3357_v9 }
 0x4ca   :  { %v1686_v33 = vsel %vm446_vm2, %v1552_v23, 0.0  ;;  %v1557_v34 = vmul.f32 %v2318_v54, %v3324_v61  ;;  %v1292_v15 = vpop.f32.mrf.mxu1 }
 0x4cb   :  { %v1687_v26 = vrot.slane %v1686_v33, 4  ;;  %v1260_v58 = vpop.f32.mrf.mxu0  ;;  %v1697_v36 = vadd.f32 %v1696_v22, %v1695_v28  ;;  %v1682_v48 = vrot.slane %v1681_v30, 2  ;;  %v1702_v41 = vadd.f32 %v1701_v38, %v1700_v57 }
 0x4cc   :  { %v1555_v18 = vmul.f32 %v3309_v29, %v1260_v58  ;;  %v1777_v56 = vsel %vm446_vm2, %v1565_v1, 0.0  ;;  %v1721_v43 = vsel %vm446_vm2, %v1557_v34, 0.0  ;;  %v1563_v9 = vmul.f32 %v3321_v39, %v1292_v15  ;;  %v2327_v29 = vpop.f32.mrf.mxu1 }
 0x4cd   :  { %v1688_v62 = vadd.f32 %v1687_v26, %v1686_v33  ;;  %v2319_v20 = vpop.f32.mrf.mxu0  ;;  %v1698_v21 = vrot.slane %v1697_v36, 1  ;;  %v1683_v61 = vadd.f32 %v1682_v48, %v1681_v30  ;;  %v1703_v27 = vrot.slane %v1702_v41, 2 }
 0x4ce   :  { %v1707_v45 = vsel %vm446_vm2, %v1555_v18, 0.0  ;;  %v1778_v2 = vrot.slane %v1777_v56, 4  ;;  %v1722_v4 = vrot.slane %v1721_v43, 4  ;;  %v1763_v5 = vsel %vm446_vm2, %v1563_v9, 0.0  ;;  %v1295_v7 = vpop.f32.mrf.mxu1 }
 0x4cf   :  { %v1689_v37 = vrot.slane %v1688_v62, 2  ;;  %v1708_v49 = vrot.slane %v1707_v45, 4  ;;  %v1263_v47 = vpop.f32.mrf.mxu0  ;;  %v1699_v24 = vadd.f32 %v1698_v21, %v1697_v36  ;;  %v1684_v44 = vrot.slane %v1683_v61, 1 }
 0x4d0   :  { %v1704_v25 = vadd.f32 %v1703_v27, %v1702_v41  ;;  %v1558_v39 = vmul.f32 %v2319_v20, %v1478_v0  ;;  %v1779_v14 = vadd.f32 %v1778_v2, %v1777_v56  ;;  %v1723_v11 = vadd.f32 %v1722_v4, %v1721_v43 }
 0x4d1   :  { %v1690_v19 = vadd.f32 %v1689_v37, %v1688_v62  ;;  %v1709_v59 = vadd.f32 %v1708_v49, %v1707_v45  ;;  %v2322_v10 = vpop.f32.mrf.mxu0  ;;  %v1764_v63 = vrot.slane %v1763_v5, 4  ;;  %v3433_v31 = vmul.f32 %v1835_v6, %v1699_v24 }
 0x4d2   :  { %v1728_v35 = vsel %vm446_vm2, %v1558_v39, 0.0  ;;  %v1685_v28 = vadd.f32 %v1684_v44, %v1683_v61  ;;  %v1705_v53 = vrot.slane %v1704_v25, 1  ;;  %v1566_v23 = vmul.f32 %v2327_v29, %v1534_v42 }
 0x4d3   :  { %v1691_v3 = vrot.slane %v1690_v19, 1  ;;  %v1710_v46 = vrot.slane %v1709_v59, 2  ;;  %v1729_v52 = vrot.slane %v1728_v35, 4  ;;  %v1564_v22 = vmul.f32 %v3339_v32, %v1295_v7  ;;  %v1276_v30 = vpop.f32.mrf.mxu0 }
 0x4d4   :  { %v1780_v38 = vrot.slane %v1779_v14, 2  ;;  %v1724_v54 = vrot.slane %v1723_v11, 2  ;;  %v1837_v33 = vrot.slane %v3424_v50, 4  ;;  %v1840_v26 = vrot.slane %v3424_v50, 7 }
 0x4d5   :  { %v1692_v57 = vadd.f32 %v1691_v3, %v1690_v19  ;;  %v1765_v1 = vadd.f32 %v1764_v63, %v1763_v5  ;;  %v1711_v34 = vadd.f32 %v1710_v46, %v1709_v59  ;;  %v1730_v58 = vadd.f32 %v1729_v52, %v1728_v35  ;;  %v2323_v37 = vpop.f32.mrf.mxu0 }
 0x4d6   :  { %v1770_v36 = vsel %vm446_vm2, %v1564_v22, 0.0  ;;  %v1981_v48 = vrot.slane %v3433_v31, 6  ;;  %v1896_v41 = vmul.f32 %v3424_v50, %v1685_v28  ;;  %v1838_v15 = vrot.slane %v3424_v50, 5 }
 0x4d7   :  { %v1842_v32 = vrot.slane %v3431_v12, 2  ;;  %v1706_v18 = vadd.f32 %v1705_v53, %v1704_v25  ;;  %v1897_v62 = vmul.f32 %v1834_v60, %v1692_v57  ;;  %v1784_v20 = vsel %vm446_vm2, %v1566_v23, 0.0  ;;  %v1279_v5 = vpop.f32.mrf.mxu0 }
 0x4d8   :  { %v1731_v45 = vrot.slane %v1730_v58, 2  ;;  %v3445_v56 = vadd.f32 %v1780_v38, %v1779_v14  ;;  %v1771_v43 = vrot.slane %v1770_v36, 4  ;;  %v1556_v9 = vmul.f32 %v3317_v16, %v1263_v47 }
 0x4d9   :  { %v1561_v21 = vmul.f32 %v2322_v10, %v3303_v55  ;;  %v1725_v61 = vadd.f32 %v1724_v54, %v1723_v11  ;;  %v1766_v27 = vrot.slane %v1765_v1, 2  ;;  %v1712_v49 = vrot.slane %v1711_v34, 1 }
 0x4da   :  { %v1559_v19 = vmul.f32 %v3305_v51, %v1276_v30  ;;  %v1785_v2 = vrot.slane %v1784_v20, 4  ;;  %v1714_v4 = vsel %vm446_vm2, %v1556_v9, 0.0  ;;  %v1562_v0 = vmul.f32 %v2323_v37, %v3315_v13 }
 0x4db   :  { %v1749_v29 = vsel %vm446_vm2, %v1561_v21, 0.0  ;;  %v1899_v59 = vmul.f32 %v1836_v8, %v1706_v18  ;;  %v1979_v24 = vrot.slane %v1897_v62, 7  ;;  %v1732_v44 = vadd.f32 %v1731_v45, %v1730_v58 }
 0x4dc   :  { %v1715_v25 = vrot.slane %v1714_v4, 4  ;;  %v1772_v16 = vadd.f32 %v1771_v43, %v1770_v36  ;;  %v1750_v47 = vrot.slane %v1749_v29, 4  ;;  %v1735_v55 = vsel %vm446_vm2, %v1559_v19, 0.0 }
 0x4dd   :  { %v1756_v3 = vsel %vm446_vm2, %v1562_v0, 0.0  ;;  %v1726_v39 = vrot.slane %v1725_v61, 1  ;;  %v1713_v51 = vadd.f32 %v1712_v49, %v1711_v34  ;;  %v1736_v6 = vrot.slane %v1735_v55, 4 }
 0x4de   :  { %v1716_v10 = vadd.f32 %v1715_v25, %v1714_v4  ;;  %v1786_v14 = vadd.f32 %v1785_v2, %v1784_v20  ;;  %v1751_v11 = vadd.f32 %v1750_v47, %v1749_v29  ;;  %v1757_v42 = vrot.slane %v1756_v3, 4 }
 0x4df   :  { %v1560_v13 = vmul.f32 %v3295_v40, %v1279_v5  ;;  %v1980_v8 = vsel %vm1945_vm4, %v1979_v24, %v1896_v41  ;;  %v1733_v7 = vrot.slane %v1732_v44, 1  ;;  %v1737_v63 = vadd.f32 %v1736_v6, %v1735_v55 }
 0x4e0   :  { %v1717_v60 = vrot.slane %v1716_v10, 2  ;;  %v1773_v46 = vrot.slane %v1772_v16, 2  ;;  %v1752_v35 = vrot.slane %v1751_v11, 2  ;;  %v1758_v31 = vadd.f32 %v1757_v42, %v1756_v3 }
 0x4e1   :  { %v1742_v28 = vsel %vm446_vm2, %v1560_v13, 0.0  ;;  %v1727_v53 = vadd.f32 %v1726_v39, %v1725_v61  ;;  %v1900_v57 = vmul.f32 %v1837_v33, %v1713_v51  ;;  %v1738_v52 = vrot.slane %v1737_v63, 2 }
 0x4e2   :  { %v1718_v23 = vadd.f32 %v1717_v60, %v1716_v10  ;;  %v1787_v22 = vrot.slane %v1786_v14, 2  ;;  %v1753_v30 = vadd.f32 %v1752_v35, %v1751_v11  ;;  %v1759_v38 = vrot.slane %v1758_v31, 2 }
 0x4e3   :  { %v1743_v54 = vrot.slane %v1742_v28, 4  ;;  %v1982_v40 = vsel %vm1948_vm5, %v1981_v48, %v1980_v8  ;;  %v1767_v34 = vadd.f32 %v1766_v27, %v1765_v1  ;;  %v1734_v58 = vadd.f32 %v1733_v7, %v1732_v44 }
 0x4e4   :  { %v1719_v36 = vrot.slane %v1718_v23, 1  ;;  %v1774_v41 = vadd.f32 %v1773_v46, %v1772_v16  ;;  %v1739_v18 = vadd.f32 %v1738_v52, %v1737_v63  ;;  %v1760_v62 = vadd.f32 %v1759_v38, %v1758_v31 }
 0x4e5   :  { %v1744_v20 = vadd.f32 %v1743_v54, %v1742_v28  ;;  %v1983_v45 = vrot.slane %v1899_v59, 5  ;;  %v1902_v37 = vmul.f32 %v1839_v17, %v1727_v53  ;;  %v1754_v43 = vrot.slane %v1753_v30, 1 }
 0x4e6   :  { %v1720_v33 = vadd.f32 %v1719_v36, %v1718_v23  ;;  %v1985_v9 = vrot.slane %v1900_v57, 4  ;;  %v1788_v21 = vadd.f32 %v1787_v22, %v1786_v14  ;;  %v1761_v61 = vrot.slane %v1760_v62, 1 }
 0x4e7   :  { %v1745_v49 = vrot.slane %v1744_v20, 2  ;;  %v1768_v19 = vrot.slane %v1767_v34, 1  ;;  %v1984_v48 = vsel %vm1951_vm6, %v1983_v45, %v1982_v40  ;;  %v1903_v1 = vmul.f32 %v1840_v26, %v1734_v58 }
 0x4e8   :  { %v1901_v27 = vmul.f32 %v1838_v15, %v1720_v33  ;;  %v1775_v2 = vrot.slane %v1774_v41, 1  ;;  %v1740_v4 = vrot.slane %v1739_v18, 1  ;;  %v1843_v29 = vrot.slane %v3431_v12, 3 }
 0x4e9   :  { %v1746_v17 = vadd.f32 %v1745_v49, %v1744_v20  ;;  %v1782_v0 = vrot.slane %v3445_v56, 1  ;;  %v1989_v59 = vrot.slane %v1902_v37, 2  ;;  %v1755_v44 = vadd.f32 %v1754_v43, %v1753_v30 }
 0x4ea   :  { %v1987_v24 = vrot.slane %v1901_v27, 3  ;;  %v1986_v25 = vsel %vm1954_vm7, %v1985_v9, %v1984_v48  ;;  %v1789_v5 = vrot.slane %v1788_v21, 1  ;;  %v1762_v16 = vadd.f32 %v1761_v61, %v1760_v62 }
 0x4eb   :  { %v1747_v47 = vrot.slane %v1746_v17, 1  ;;  %v1769_v55 = vadd.f32 %v1768_v19, %v1767_v34  ;;  %v1991_v26 = vrot.slane %v1903_v1, 1  ;;  %v1841_v15 = vrot.slane %v3431_v12, 1 }
 0x4ec   :  { %v1988_v50 = vsel %vm1957_vm8, %v1987_v24, %v1986_v25  ;;  %v1776_v3 = vadd.f32 %v1775_v2, %v1774_v41  ;;  %v1741_v51 = vadd.f32 %v1740_v4, %v1739_v18  ;;  %v1783_v6 = vadd.f32 %v1782_v0, %v3445_v56 }
 0x4ed   :  { %v1990_v39 = vsel %vm1960_vm9, %v1989_v59, %v1988_v50  ;;  %v1748_v10 = vadd.f32 %v1747_v47, %v1746_v17  ;;  %v1844_v14 = vrot.slane %v3431_v12, 4  ;;  %v1906_v42 = vmul.f32 %v1842_v32, %v1755_v44 }
 0x4ee   :  { %v1992_v11 = vsel %vm1963_vm10, %v1991_v26, %v1990_v39  ;;  %v1790_v13 = vadd.f32 %v1789_v5, %v1788_v21  ;;  %v1845_v8 = vrot.slane %v3431_v12, 5  ;;  %v1907_v7 = vmul.f32 %v1843_v29, %v1762_v16 }
 0x4ef   :  { %2013 = vst.msk [vmem:[%s3501_s5 + $0x10] sm:$0xff] %vm446_vm2, %v1992_v11  ;;  %v1905_v60 = vmul.f32 %v1841_v15, %v1748_v10  ;;  %v1846_v63 = vrot.slane %v3431_v12, 6  ;;  %v1908_v56 = vmul.f32 %v1844_v14, %v1769_v55  ;;  %v1847_v46 = vrot.slane %v3431_v12, 7 }
 0x4f0   :  { %v1909_v35 = vmul.f32 %v1845_v8, %v1776_v3  ;;  %v1904_v31 = vmul.f32 %v3431_v12, %v1741_v51  ;;  %v1995_v53 = vrot.slane %v1906_v42, 6  ;;  %v1997_v23 = vrot.slane %v1907_v7, 5 }
 0x4f1   :  { %v1993_v28 = vrot.slane %v1905_v60, 7  ;;  %v1910_v32 = vmul.f32 %v1846_v63, %v1783_v6  ;;  %v1911_v57 = vmul.f32 %v1847_v46, %v1790_v13  ;;  %v1999_v22 = vrot.slane %v1908_v56, 4 }
 0x4f2   :  { %v2001_v38 = vrot.slane %v1909_v35, 3 }
 0x4f3   :  { %v1994_v52 = vsel %vm1945_vm4, %v1993_v28, %v1904_v31  ;;  %v2003_v40 = vrot.slane %v1910_v32, 2  ;;  %v2005_v58 = vrot.slane %v1911_v57, 1 }
 0x4f4   :  { %v1996_v30 = vsel %vm1948_vm5, %v1995_v53, %v1994_v52 }
 0x4f5   :  { %v1998_v54 = vsel %vm1951_vm6, %v1997_v23, %v1996_v30 }
 0x4f6   :  { %v2000_v34 = vsel %vm1954_vm7, %v1999_v22, %v1998_v54 }
 0x4f7   :  { %v2002_v36 = vsel %vm1957_vm8, %v2001_v38, %v2000_v34 }
 0x4f8   :  { %v2004_v12 = vsel %vm1960_vm9, %v2003_v40, %v2002_v36 }
 0x4f9   :  { %v2006_v41 = vsel %vm1963_vm10, %v2005_v58, %v2004_v12 }
 0x4fa   :  { %2014 = vst.msk [vmem:[%s3501_s5 + $0x18] sm:$0xff] %vm446_vm2, %v2006_v41 }

</bundles_post_ra>
